<compile_context>
chip_gen: v7x
topology: tpu7x:2x2x1
jax: 0.10.0
libtpu: 0.0.40
codegen_flags: <defaults>
</compile_context>

<pallas_src>
import functools
import math

import jax
import jax.numpy as jnp
from jax import lax
from jax.experimental import pallas as pl
from jax.experimental.pallas import tpu as pltpu

LN_EPS = 1e-5


# ------------------------------ Pallas kernel -------------------------------
def _cnn_encoder_kernel(ids_ref, wconv_ref, bconv_ref, wres_ref, bres_ref,
                        ln_g_ref, ln_b_ref, wfin_ref, wfres_ref, bout_ref,
                        out_ref, yall_ref, res_ref, *,
                        t_tile, kmax, pad, n_branch, num_filters, scale, eps):
    """One grid step == (Bb batch elements) x (Tt time rows).

    ids_ref  : (Bb, Tpad, 1) int32   padded token ids (-1 => zero one-hot row)
    wconv_ref: (KMAX, R, NB*F)       merged, center-aligned conv taps
    bconv_ref: (1, NB*F)             merged conv biases
    wres_ref : (R, F)                residual_resize weight (transposed)
    bres_ref : (1, F)                residual_resize bias
    ln_g/b   : (1, F)                shared LayerNorm gamma / beta
    wfin_ref : (NB*F, H)             final_resize weight (transposed, un-split)
    wfres_ref: (R, H)                final_residual_resize weight (transposed)
    bout_ref : (1, H)                b_final_residual + b_final
    out_ref  : (Bb, Tt, H)           output tile
    yall_ref : (Bb*Tt, NB*F) f32     VMEM scratch: conv result / post-LN slab
    res_ref  : (Bb*Tt, F)    f32     VMEM scratch: shared residual branch
    """
    Bb = ids_ref.shape[0]
    Tt = t_tile
    M = Bb * Tt
    R = wconv_ref.shape[1]
    F = num_filters
    H = out_ref.shape[-1]

    t0 = pl.program_id(1) * Tt                    # tile start (padded-time coords)
    lane_iota = lax.broadcasted_iota(jnp.int32, (Bb, Tt, R), 2)

    def onehot_tap(m):
        # Slice the (tiny) int id column straight off the ref, then build the
        # one-hot in vregs: pad id (-1) never matches the iota -> zero rows.
        ids_win = ids_ref[:, pl.ds(t0 + m, Tt), :]            # (Bb, Tt, 1) int32
        oh = (ids_win == lane_iota).astype(jnp.float32)       # (Bb, Tt, R)
        return oh.reshape(M, R)

    # ---- merged convolution: KMAX matmuls of (M, R) @ (R, NB*F) -------------
    oh_c = None
    for m in range(kmax):
        oh = onehot_tap(m)
        if m == pad:
            oh_c = oh                              # center tap == un-shifted rows
        w_m = wconv_ref[m]                         # (R, NB*F)
        contrib = jnp.dot(oh.astype(w_m.dtype), w_m,
                          preferred_element_type=jnp.float32)
        if m == 0:
            yall_ref[...] = contrib + bconv_ref[...]
        else:
            yall_ref[...] += contrib

    # residual branch shared by every conv layer -> VMEM scratch (not vregs)
    wres = wres_ref[...]
    res_ref[...] = (jnp.dot(oh_c.astype(wres.dtype), wres,
                            preferred_element_type=jnp.float32)
                    + bres_ref[...])                           # (M, F)

    # final residual projection + folded output biases (small, kept as value)
    wfres = wfres_ref[...]
    fres = (jnp.dot(oh_c.astype(wfres.dtype), wfres,
                    preferred_element_type=jnp.float32)
            + bout_ref[...])                                   # (M, H)

    # ---- per-branch LayerNorm + ReLU + scaled residual (lane-aligned blocks)
    ln_g = ln_g_ref[...]
    ln_b = ln_b_ref[...]
    for nb in range(n_branch):
        blk = pl.ds(nb * F, F)
        conv = yall_ref[:, blk]                                # (M, F) f32
        mu = jnp.mean(conv, axis=-1, keepdims=True)
        d = conv - mu
        var = jnp.mean(d * d, axis=-1, keepdims=True)
        y = d * lax.rsqrt(var + eps) * ln_g + ln_b
        y = jnp.maximum(y, 0.0)                                # ReLU
        yall_ref[:, blk] = (y + res_ref[...]) * scale          # scaled residual

    # ---- single fused final projection: (M, NB*F) @ (NB*F, H) ---------------
    wfin = wfin_ref[...]
    acc = jnp.dot(yall_ref[...].astype(wfin.dtype), wfin,
                  preferred_element_type=jnp.float32) + fres   # (M, H)
    out_ref[...] = acc.reshape(Bb, Tt, H).astype(out_ref.dtype)


def _cnn_encoder_pallas(ids_pad, packed, *, t_out, t_tile, batch_block,
                        kmax, pad, n_branch, scale):
    B, Tpad, _ = ids_pad.shape
    KMAX, R, NBF = packed["wconv"].shape
    F = packed["wres"].shape[-1]
    H = packed["wfin"].shape[-1]

    Bb = batch_block if (B % batch_block == 0) else 1
    Tt = t_tile
    nT = t_out // Tt
    M = Bb * Tt

    kernel = functools.partial(
        _cnn_encoder_kernel, t_tile=Tt, kmax=kmax, pad=pad,
        n_branch=n_branch, num_filters=F, scale=scale, eps=LN_EPS)

    grid_spec = pltpu.PrefetchScalarGridSpec(
        num_scalar_prefetch=0,
        grid=(B // Bb, nT),
        in_specs=[
            pl.BlockSpec((Bb, Tpad, 1), lambda b, t: (b, 0, 0)),   # token ids
            pl.BlockSpec((KMAX, R, NBF), lambda b, t: (0, 0, 0)),  # merged taps
            pl.BlockSpec((1, NBF), lambda b, t: (0, 0)),           # merged bias
            pl.BlockSpec((R, F), lambda b, t: (0, 0)),             # W_res^T
            pl.BlockSpec((1, F), lambda b, t: (0, 0)),             # b_res
            pl.BlockSpec((1, F), lambda b, t: (0, 0)),             # LN gamma
            pl.BlockSpec((1, F), lambda b, t: (0, 0)),             # LN beta
            pl.BlockSpec((NBF, H), lambda b, t: (0, 0)),           # W_final^T (full)
            pl.BlockSpec((R, H), lambda b, t: (0, 0)),             # W_fres^T
            pl.BlockSpec((1, H), lambda b, t: (0, 0)),             # b_fres + b_fin
        ],
        out_specs=pl.BlockSpec((Bb, Tt, H), lambda b, t: (b, t, 0)),
        scratch_shapes=[
            pltpu.VMEM((M, NBF), jnp.float32),   # conv result / post-LN slab
            pltpu.VMEM((M, F), jnp.float32),     # shared residual branch
        ],
    )

    return pl.pallas_call(
        kernel,
        out_shape=jax.ShapeDtypeStruct((B, t_out, H), jnp.float32),
        grid_spec=grid_spec,
        compiler_params=pltpu.CompilerParams(
            dimension_semantics=("parallel", "parallel"),
            vmem_limit_bytes=32 * 1024 * 1024),
    )(ids_pad, packed["wconv"], packed["bconv"], packed["wres"],
      packed["bres"], packed["ln_g"], packed["ln_b"], packed["wfin"],
      packed["wfres"], packed["bout"])


# ------------------------------ params & packing -----------------------------
def init_params(key, *, vocab_size, out_dim, convolution_layers, kernel_sizes,
                num_filters):
    """PyTorch-layout parameters (use_one_hot=True => representation_dim = vocab)."""
    R, F, H, L = vocab_size, num_filters, out_dim, convolution_layers
    n_keys = 8 + 4 * len(kernel_sizes) * L
    keys = list(jax.random.split(key, n_keys))
    ki = iter(range(n_keys))

    def uni(shape, bound):
        return jax.random.uniform(keys[next(ki)], shape, jnp.float32, -bound, bound)

    nbf = len(kernel_sizes) * L * F
    params = {
        "w_res": uni((F, R), 1.0 / math.sqrt(R)),
        "b_res": uni((F,), 1.0 / math.sqrt(R)),
        "w_fres": uni((H, R), 1.0 / math.sqrt(R)),
        "b_fres": uni((H,), 1.0 / math.sqrt(R)),
        "w_fin": uni((H, nbf), 1.0 / math.sqrt(nbf)),
        "b_fin": uni((H,), 1.0 / math.sqrt(nbf)),
        # LayerNorm params (PyTorch inits gamma=1, beta=0; perturb slightly so
        # the test actually exercises the affine path)
        "ln_g": 1.0 + 0.05 * uni((F,), 1.0),
        "ln_b": 0.05 * uni((F,), 1.0),
        "conv_w": [],
        "conv_b": [],
    }
    for k in kernel_sizes:
        assert k % 2, "kernel sizes must be odd"
        bound = 1.0 / math.sqrt(R * k)
        ws, bs = [], []
        for _ in range(L):
            ws.append(uni((F, R, k), bound))
            bs.append(uni((F,), bound))
        params["conv_w"].append(ws)
        params["conv_b"].append(bs)
    return params


def pack_params(params, *, kernel_sizes, convolution_layers, num_filters,
                out_dim, dtype=jnp.float32):
    """One-time repack into kernel layout (merged taps, transposed weights).

    dtype=jnp.bfloat16 gives ~2-3x MXU throughput on v6e/v7x (relax the
    validation tolerance if used); biases / LN params always stay f32.
    """
    R = params["w_res"].shape[1]
    F, L = num_filters, convolution_layers
    KMAX = max(kernel_sizes)
    NB = len(kernel_sizes) * L
    NBF = NB * F

    wconv = jnp.zeros((KMAX, R, NBF), jnp.float32)
    bconv = jnp.zeros((1, NBF), jnp.float32)
    for s, k in enumerate(kernel_sizes):
        base = (KMAX - k) // 2                       # center-align taps
        for l in range(L):
            nb = s * L + l                           # == PyTorch concat order
            w_t = jnp.transpose(params["conv_w"][s][l], (2, 1, 0))   # (k, R, F)
            wconv = wconv.at[base:base + k, :, nb * F:(nb + 1) * F].set(w_t)
            bconv = bconv.at[0, nb * F:(nb + 1) * F].set(params["conv_b"][s][l])

    return {
        "wconv": wconv.astype(dtype),                          # (KMAX, R, NBF)
        "bconv": bconv,                                        # (1, NBF)
        "wres": params["w_res"].T.astype(dtype),               # (R, F)
        "bres": params["b_res"][None, :],                      # (1, F)
        "ln_g": params["ln_g"][None, :],                       # (1, F)
        "ln_b": params["ln_b"][None, :],                       # (1, F)
        "wfin": params["w_fin"].T.astype(dtype),               # (NBF, H)
        "wfres": params["w_fres"].T.astype(dtype),             # (R, H)
        "bout": (params["b_fres"] + params["b_fin"])[None, :], # (1, H)
    }


# ------------------------------ forward wrapper -------------------------------
@functools.partial(jax.jit, static_argnames=(
    "vocab_size", "kernel_sizes", "convolution_layers", "out_dim", "scale",
    "t_tile", "batch_block"))
def cnn_encoder_forward(sequence, packed, *, vocab_size, kernel_sizes,
                        convolution_layers, out_dim, scale,
                        t_tile=128, batch_block=1):
    """sequence: (B, T) int32 token ids -> (B, T, out_dim) float32."""
    del vocab_size, out_dim  # implied by packed weight shapes
    B, T = sequence.shape
    KMAX = max(kernel_sizes)
    P = (KMAX - 1) // 2
    NB = len(kernel_sizes) * convolution_layers

    # Pick the time-tile: whole sequence if it fits, else t_tile rows per step.
    Tt = T if T <= t_tile else t_tile
    nT = pl.cdiv(T, Tt)
    T_out = nT * Tt

    # Only int32 ids go to HBM (4 B/token): pad id = -1 -> all-zero one-hot row.
    ids_pad = jnp.pad(sequence.astype(jnp.int32),
                      ((0, 0), (P, P + (T_out - T))), constant_values=-1)
    ids_pad = ids_pad[:, :, None]                              # (B, T_out+2P, 1)

    out = _cnn_encoder_pallas(
        ids_pad, packed, t_out=T_out, t_tile=Tt, batch_block=batch_block,
        kmax=KMAX, pad=P, n_branch=NB, scale=scale)
    if T_out != T:
        out = out[:, :T, :]
    return out


# ------------------------------ pure-JAX reference ---------------------------
def cnn_encoder_reference(sequence, params, *, vocab_size, kernel_sizes,
                          convolution_layers, scale):
    x = jax.nn.one_hot(sequence, vocab_size, dtype=jnp.float32)   # (B, T, R)
    T = x.shape[1]
    residual = x @ params["w_res"].T + params["b_res"]            # (B, T, F)
    final_res = x @ params["w_fres"].T + params["b_fres"]         # (B, T, H)
    outs = []
    for s, k in enumerate(kernel_sizes):
        p = (k - 1) // 2
        xp = jnp.pad(x, ((0, 0), (p, p), (0, 0)))
        for l in range(convolution_layers):
            W = params["conv_w"][s][l]                            # (F, R, k)
            b = params["conv_b"][s][l]
            conv = sum(jnp.einsum("btr,fr->btf", xp[:, j:j + T, :], W[:, :, j])
                       for j in range(k)) + b
            mu = conv.mean(-1, keepdims=True)
            var = ((conv - mu) ** 2).mean(-1, keepdims=True)
            y = (conv - mu) / jnp.sqrt(var + LN_EPS) * params["ln_g"] + params["ln_b"]
            y = jnp.maximum(y, 0.0)
            y = (y + residual) * scale
            outs.append(y)
    cat = jnp.concatenate(outs, axis=-1)                          # (B, T, NB*F)
    return cat @ params["w_fin"].T + params["b_fin"] + final_res


# ------------------------------------ main ------------------------------------
if __name__ == "__main__":
    VOCAB = 16
    OUT_DIM = 32
    CONV_LAYERS = 2
    KERNEL_SIZES = (3, 5)
    NUM_FILTERS = 128            # module default
    SCALE = float(math.sqrt(0.5))  # module default
    B, T = 2, 16

    key = jax.random.PRNGKey(0)
    k_params, k_seq = jax.random.split(key)

    params = init_params(k_params, vocab_size=VOCAB, out_dim=OUT_DIM,
                         convolution_layers=CONV_LAYERS,
                         kernel_sizes=KERNEL_SIZES, num_filters=NUM_FILTERS)
    packed = pack_params(params, kernel_sizes=KERNEL_SIZES,
                         convolution_layers=CONV_LAYERS,
                         num_filters=NUM_FILTERS, out_dim=OUT_DIM)

    sequence = jax.random.randint(k_seq, (B, T), 0, VOCAB, dtype=jnp.int32)

    out = cnn_encoder_forward(sequence, packed, vocab_size=VOCAB,
                              kernel_sizes=KERNEL_SIZES,
                              convolution_layers=CONV_LAYERS,
                              out_dim=OUT_DIM, scale=SCALE)
    out = jax.block_until_ready(out)

    ref = cnn_encoder_reference(sequence, params, vocab_size=VOCAB,
                                kernel_sizes=KERNEL_SIZES,
                                convolution_layers=CONV_LAYERS, scale=SCALE)

    assert out.shape == (B, T, OUT_DIM), out.shape
    err = float(jnp.max(jnp.abs(out - ref)))
    assert jnp.allclose(out, ref, atol=1e-4, rtol=1e-4), f"mismatch vs reference ({err})"

    print("KERNEL_OK")
</pallas_src>

<mosaic_0001>
module attributes {stable_mosaic.version = 11 : i64} {
  func.func @_cnn_encoder_kernel(%arg0: i32, %arg1: i32, %arg2: memref<1x20x1xi32, #tpu.memory_space<vmem>>, %arg3: memref<5x16x512xf32, #tpu.memory_space<vmem>>, %arg4: memref<1x512xf32, #tpu.memory_space<vmem>>, %arg5: memref<16x128xf32, #tpu.memory_space<vmem>>, %arg6: memref<1x128xf32, #tpu.memory_space<vmem>>, %arg7: memref<1x128xf32, #tpu.memory_space<vmem>>, %arg8: memref<1x128xf32, #tpu.memory_space<vmem>>, %arg9: memref<512x32xf32, #tpu.memory_space<vmem>>, %arg10: memref<16x32xf32, #tpu.memory_space<vmem>>, %arg11: memref<1x32xf32, #tpu.memory_space<vmem>>, %arg12: memref<1x16x32xf32, #tpu.memory_space<vmem>>, %arg13: memref<16x512xf32, #tpu.memory_space<vmem>>, %arg14: memref<16x128xf32, #tpu.memory_space<vmem>>) attributes {dimension_semantics = [#tpu.dimension_semantics<parallel>, #tpu.dimension_semantics<parallel>], iteration_bounds = array<i64: 2, 1>, scalar_prefetch = 0 : i64, scratch_operands = 2 : i64, tpu.core_type = #tpu.core_type<tc>, window_params = [{transform_indices = @transform_0, window_bounds = array<i64: 1, 20, 1>}, {pipeline_mode = #tpu.pipeline_mode<synchronous>, transform_indices = @transform_1, window_bounds = array<i64: 5, 16, 512>}, {pipeline_mode = #tpu.pipeline_mode<synchronous>, transform_indices = @transform_2, window_bounds = array<i64: 1, 512>}, {pipeline_mode = #tpu.pipeline_mode<synchronous>, transform_indices = @transform_3, window_bounds = array<i64: 16, 128>}, {pipeline_mode = #tpu.pipeline_mode<synchronous>, transform_indices = @transform_4, window_bounds = array<i64: 1, 128>}, {pipeline_mode = #tpu.pipeline_mode<synchronous>, transform_indices = @transform_5, window_bounds = array<i64: 1, 128>}, {pipeline_mode = #tpu.pipeline_mode<synchronous>, transform_indices = @transform_6, window_bounds = array<i64: 1, 128>}, {pipeline_mode = #tpu.pipeline_mode<synchronous>, transform_indices = @transform_7, window_bounds = array<i64: 512, 32>}, {pipeline_mode = #tpu.pipeline_mode<synchronous>, transform_indices = @transform_8, window_bounds = array<i64: 16, 32>}, {pipeline_mode = #tpu.pipeline_mode<synchronous>, transform_indices = @transform_9, window_bounds = array<i64: 1, 32>}, {transform_indices = @transform_10, window_bounds = array<i64: 1, 16, 32>}]} {
    %c16_i32 = arith.constant 16 : i32
    %0 = arith.muli %arg1, %c16_i32 : i32
    %1 = tpu.iota {dimensions = array<i32: 2>} : vector<1x16x16xi32>
    %c0_i32 = arith.constant 0 : i32
    %2 = arith.addi %0, %c0_i32 : i32
    %c0 = arith.constant 0 : index
    %3 = arith.index_cast %2 : i32 to index
    %c0_0 = arith.constant 0 : index
    %4 = vector.load %arg2[%c0, %3, %c0_0] : memref<1x20x1xi32, #tpu.memory_space<vmem>>, vector<1x16x1xi32>
    %5 = vector.broadcast %4 : vector<1x16x1xi32> to vector<1x16x16xi32>
    %6 = arith.cmpi eq, %5, %1 : vector<1x16x16xi32>
    %7 = arith.extui %6 : vector<1x16x16xi1> to vector<1x16x16xi32>
    %8 = arith.sitofp %7 : vector<1x16x16xi32> to vector<1x16x16xf32>
    %9 = vector.shape_cast %8 : vector<1x16x16xf32> to vector<16x16xf32>
    %c0_1 = arith.constant 0 : index
    %c0_2 = arith.constant 0 : index
    %c0_3 = arith.constant 0 : index
    %10 = vector.load %arg3[%c0_1, %c0_2, %c0_3] : memref<5x16x512xf32, #tpu.memory_space<vmem>>, vector<1x16x512xf32>
    %11 = vector.shape_cast %10 : vector<1x16x512xf32> to vector<16x512xf32>
    %cst = arith.constant dense<0.000000e+00> : vector<16x512xf32>
    %12 = tpu.matmul %9, %11, %cst {dimension_numbers = #tpu.dot_dimension_numbers<[1], [0], [0], [1], [0, 0, 1, 1], [], []>} : vector<16x16xf32>, vector<16x512xf32>, vector<16x512xf32> -> vector<16x512xf32>
    %c0_4 = arith.constant 0 : index
    %c0_5 = arith.constant 0 : index
    %13 = vector.load %arg4[%c0_4, %c0_5] : memref<1x512xf32, #tpu.memory_space<vmem>>, vector<1x512xf32>
    %14 = vector.broadcast %13 : vector<1x512xf32> to vector<16x512xf32>
    %15 = arith.addf %12, %14 : vector<16x512xf32>
    %c0_6 = arith.constant 0 : index
    %c0_7 = arith.constant 0 : index
    %16 = vector.load %arg13[%c0_6, %c0_7] : memref<16x512xf32, #tpu.memory_space<vmem>>, vector<16x512xf32>
    tpu.vector_store %arg13[%c0_6, %c0_7], %15 {strides = array<i32>} : memref<16x512xf32, #tpu.memory_space<vmem>>, vector<16x512xf32>,
    %c1_i32 = arith.constant 1 : i32
    %17 = arith.addi %0, %c1_i32 : i32
    %c0_8 = arith.constant 0 : index
    %18 = arith.index_cast %17 : i32 to index
    %c0_9 = arith.constant 0 : index
    %19 = vector.load %arg2[%c0_8, %18, %c0_9] : memref<1x20x1xi32, #tpu.memory_space<vmem>>, vector<1x16x1xi32>
    %20 = vector.broadcast %19 : vector<1x16x1xi32> to vector<1x16x16xi32>
    %21 = arith.cmpi eq, %20, %1 : vector<1x16x16xi32>
    %22 = arith.extui %21 : vector<1x16x16xi1> to vector<1x16x16xi32>
    %23 = arith.sitofp %22 : vector<1x16x16xi32> to vector<1x16x16xf32>
    %24 = vector.shape_cast %23 : vector<1x16x16xf32> to vector<16x16xf32>
    %c1 = arith.constant 1 : index
    %c0_10 = arith.constant 0 : index
    %c0_11 = arith.constant 0 : index
    %25 = vector.load %arg3[%c1, %c0_10, %c0_11] : memref<5x16x512xf32, #tpu.memory_space<vmem>>, vector<1x16x512xf32>
    %26 = vector.shape_cast %25 : vector<1x16x512xf32> to vector<16x512xf32>
    %cst_12 = arith.constant dense<0.000000e+00> : vector<16x512xf32>
    %27 = tpu.matmul %24, %26, %cst_12 {dimension_numbers = #tpu.dot_dimension_numbers<[1], [0], [0], [1], [0, 0, 1, 1], [], []>} : vector<16x16xf32>, vector<16x512xf32>, vector<16x512xf32> -> vector<16x512xf32>
    %c0_13 = arith.constant 0 : index
    %c0_14 = arith.constant 0 : index
    %28 = vector.load %arg13[%c0_13, %c0_14] : memref<16x512xf32, #tpu.memory_space<vmem>>, vector<16x512xf32>
    %29 = arith.addf %28, %27 : vector<16x512xf32>
    %c0_15 = arith.constant 0 : index
    %c0_16 = arith.constant 0 : index
    %30 = vector.load %arg13[%c0_15, %c0_16] : memref<16x512xf32, #tpu.memory_space<vmem>>, vector<16x512xf32>
    tpu.vector_store %arg13[%c0_15, %c0_16], %29 {strides = array<i32>} : memref<16x512xf32, #tpu.memory_space<vmem>>, vector<16x512xf32>,
    %c2_i32 = arith.constant 2 : i32
    %31 = arith.addi %0, %c2_i32 : i32
    %c0_17 = arith.constant 0 : index
    %32 = arith.index_cast %31 : i32 to index
    %c0_18 = arith.constant 0 : index
    %33 = vector.load %arg2[%c0_17, %32, %c0_18] : memref<1x20x1xi32, #tpu.memory_space<vmem>>, vector<1x16x1xi32>
    %34 = vector.broadcast %33 : vector<1x16x1xi32> to vector<1x16x16xi32>
    %35 = arith.cmpi eq, %34, %1 : vector<1x16x16xi32>
    %36 = arith.extui %35 : vector<1x16x16xi1> to vector<1x16x16xi32>
    %37 = arith.sitofp %36 : vector<1x16x16xi32> to vector<1x16x16xf32>
    %38 = vector.shape_cast %37 : vector<1x16x16xf32> to vector<16x16xf32>
    %c2 = arith.constant 2 : index
    %c0_19 = arith.constant 0 : index
    %c0_20 = arith.constant 0 : index
    %39 = vector.load %arg3[%c2, %c0_19, %c0_20] : memref<5x16x512xf32, #tpu.memory_space<vmem>>, vector<1x16x512xf32>
    %40 = vector.shape_cast %39 : vector<1x16x512xf32> to vector<16x512xf32>
    %cst_21 = arith.constant dense<0.000000e+00> : vector<16x512xf32>
    %41 = tpu.matmul %38, %40, %cst_21 {dimension_numbers = #tpu.dot_dimension_numbers<[1], [0], [0], [1], [0, 0, 1, 1], [], []>} : vector<16x16xf32>, vector<16x512xf32>, vector<16x512xf32> -> vector<16x512xf32>
    %c0_22 = arith.constant 0 : index
    %c0_23 = arith.constant 0 : index
    %42 = vector.load %arg13[%c0_22, %c0_23] : memref<16x512xf32, #tpu.memory_space<vmem>>, vector<16x512xf32>
    %43 = arith.addf %42, %41 : vector<16x512xf32>
    %c0_24 = arith.constant 0 : index
    %c0_25 = arith.constant 0 : index
    %44 = vector.load %arg13[%c0_24, %c0_25] : memref<16x512xf32, #tpu.memory_space<vmem>>, vector<16x512xf32>
    tpu.vector_store %arg13[%c0_24, %c0_25], %43 {strides = array<i32>} : memref<16x512xf32, #tpu.memory_space<vmem>>, vector<16x512xf32>,
    %c3_i32 = arith.constant 3 : i32
    %45 = arith.addi %0, %c3_i32 : i32
    %c0_26 = arith.constant 0 : index
    %46 = arith.index_cast %45 : i32 to index
    %c0_27 = arith.constant 0 : index
    %47 = vector.load %arg2[%c0_26, %46, %c0_27] : memref<1x20x1xi32, #tpu.memory_space<vmem>>, vector<1x16x1xi32>
    %48 = vector.broadcast %47 : vector<1x16x1xi32> to vector<1x16x16xi32>
    %49 = arith.cmpi eq, %48, %1 : vector<1x16x16xi32>
    %50 = arith.extui %49 : vector<1x16x16xi1> to vector<1x16x16xi32>
    %51 = arith.sitofp %50 : vector<1x16x16xi32> to vector<1x16x16xf32>
    %52 = vector.shape_cast %51 : vector<1x16x16xf32> to vector<16x16xf32>
    %c3 = arith.constant 3 : index
    %c0_28 = arith.constant 0 : index
    %c0_29 = arith.constant 0 : index
    %53 = vector.load %arg3[%c3, %c0_28, %c0_29] : memref<5x16x512xf32, #tpu.memory_space<vmem>>, vector<1x16x512xf32>
    %54 = vector.shape_cast %53 : vector<1x16x512xf32> to vector<16x512xf32>
    %cst_30 = arith.constant dense<0.000000e+00> : vector<16x512xf32>
    %55 = tpu.matmul %52, %54, %cst_30 {dimension_numbers = #tpu.dot_dimension_numbers<[1], [0], [0], [1], [0, 0, 1, 1], [], []>} : vector<16x16xf32>, vector<16x512xf32>, vector<16x512xf32> -> vector<16x512xf32>
    %c0_31 = arith.constant 0 : index
    %c0_32 = arith.constant 0 : index
    %56 = vector.load %arg13[%c0_31, %c0_32] : memref<16x512xf32, #tpu.memory_space<vmem>>, vector<16x512xf32>
    %57 = arith.addf %56, %55 : vector<16x512xf32>
    %c0_33 = arith.constant 0 : index
    %c0_34 = arith.constant 0 : index
    %58 = vector.load %arg13[%c0_33, %c0_34] : memref<16x512xf32, #tpu.memory_space<vmem>>, vector<16x512xf32>
    tpu.vector_store %arg13[%c0_33, %c0_34], %57 {strides = array<i32>} : memref<16x512xf32, #tpu.memory_space<vmem>>, vector<16x512xf32>,
    %c4_i32 = arith.constant 4 : i32
    %59 = arith.addi %0, %c4_i32 : i32
    %c0_35 = arith.constant 0 : index
    %60 = arith.index_cast %59 : i32 to index
    %c0_36 = arith.constant 0 : index
    %61 = vector.load %arg2[%c0_35, %60, %c0_36] : memref<1x20x1xi32, #tpu.memory_space<vmem>>, vector<1x16x1xi32>
    %62 = vector.broadcast %61 : vector<1x16x1xi32> to vector<1x16x16xi32>
    %63 = arith.cmpi eq, %62, %1 : vector<1x16x16xi32>
    %64 = arith.extui %63 : vector<1x16x16xi1> to vector<1x16x16xi32>
    %65 = arith.sitofp %64 : vector<1x16x16xi32> to vector<1x16x16xf32>
    %66 = vector.shape_cast %65 : vector<1x16x16xf32> to vector<16x16xf32>
    %c4 = arith.constant 4 : index
    %c0_37 = arith.constant 0 : index
    %c0_38 = arith.constant 0 : index
    %67 = vector.load %arg3[%c4, %c0_37, %c0_38] : memref<5x16x512xf32, #tpu.memory_space<vmem>>, vector<1x16x512xf32>
    %68 = vector.shape_cast %67 : vector<1x16x512xf32> to vector<16x512xf32>
    %cst_39 = arith.constant dense<0.000000e+00> : vector<16x512xf32>
    %69 = tpu.matmul %66, %68, %cst_39 {dimension_numbers = #tpu.dot_dimension_numbers<[1], [0], [0], [1], [0, 0, 1, 1], [], []>} : vector<16x16xf32>, vector<16x512xf32>, vector<16x512xf32> -> vector<16x512xf32>
    %c0_40 = arith.constant 0 : index
    %c0_41 = arith.constant 0 : index
    %70 = vector.load %arg13[%c0_40, %c0_41] : memref<16x512xf32, #tpu.memory_space<vmem>>, vector<16x512xf32>
    %71 = arith.addf %70, %69 : vector<16x512xf32>
    %c0_42 = arith.constant 0 : index
    %c0_43 = arith.constant 0 : index
    %72 = vector.load %arg13[%c0_42, %c0_43] : memref<16x512xf32, #tpu.memory_space<vmem>>, vector<16x512xf32>
    tpu.vector_store %arg13[%c0_42, %c0_43], %71 {strides = array<i32>} : memref<16x512xf32, #tpu.memory_space<vmem>>, vector<16x512xf32>,
    %c0_44 = arith.constant 0 : index
    %c0_45 = arith.constant 0 : index
    %73 = vector.load %arg5[%c0_44, %c0_45] : memref<16x128xf32, #tpu.memory_space<vmem>>, vector<16x128xf32>
    %cst_46 = arith.constant dense<0.000000e+00> : vector<16x128xf32>
    %74 = tpu.matmul %38, %73, %cst_46 {dimension_numbers = #tpu.dot_dimension_numbers<[1], [0], [0], [1], [0, 0, 1, 1], [], []>} : vector<16x16xf32>, vector<16x128xf32>, vector<16x128xf32> -> vector<16x128xf32>
    %c0_47 = arith.constant 0 : index
    %c0_48 = arith.constant 0 : index
    %75 = vector.load %arg6[%c0_47, %c0_48] : memref<1x128xf32, #tpu.memory_space<vmem>>, vector<1x128xf32>
    %76 = vector.broadcast %75 : vector<1x128xf32> to vector<16x128xf32>
    %77 = arith.addf %74, %76 : vector<16x128xf32>
    %c0_49 = arith.constant 0 : index
    %c0_50 = arith.constant 0 : index
    %78 = vector.load %arg14[%c0_49, %c0_50] : memref<16x128xf32, #tpu.memory_space<vmem>>, vector<16x128xf32>
    tpu.vector_store %arg14[%c0_49, %c0_50], %77 {strides = array<i32>} : memref<16x128xf32, #tpu.memory_space<vmem>>, vector<16x128xf32>,
    %c0_51 = arith.constant 0 : index
    %c0_52 = arith.constant 0 : index
    %79 = vector.load %arg10[%c0_51, %c0_52] : memref<16x32xf32, #tpu.memory_space<vmem>>, vector<16x32xf32>
    %cst_53 = arith.constant dense<0.000000e+00> : vector<16x32xf32>
    %80 = tpu.matmul %38, %79, %cst_53 {dimension_numbers = #tpu.dot_dimension_numbers<[1], [0], [0], [1], [0, 0, 1, 1], [], []>} : vector<16x16xf32>, vector<16x32xf32>, vector<16x32xf32> -> vector<16x32xf32>
    %c0_54 = arith.constant 0 : index
    %c0_55 = arith.constant 0 : index
    %81 = vector.load %arg11[%c0_54, %c0_55] : memref<1x32xf32, #tpu.memory_space<vmem>>, vector<1x32xf32>
    %82 = vector.broadcast %81 : vector<1x32xf32> to vector<16x32xf32>
    %83 = arith.addf %80, %82 : vector<16x32xf32>
    %c0_56 = arith.constant 0 : index
    %c0_57 = arith.constant 0 : index
    %84 = vector.load %arg7[%c0_56, %c0_57] : memref<1x128xf32, #tpu.memory_space<vmem>>, vector<1x128xf32>
    %c0_58 = arith.constant 0 : index
    %c0_59 = arith.constant 0 : index
    %85 = vector.load %arg8[%c0_58, %c0_59] : memref<1x128xf32, #tpu.memory_space<vmem>>, vector<1x128xf32>
    %c0_60 = arith.constant 0 : index
    %c0_61 = arith.constant 0 : index
    %86 = vector.load %arg13[%c0_60, %c0_61] : memref<16x512xf32, #tpu.memory_space<vmem>>, vector<16x128xf32>
    %cst_62 = arith.constant dense<0.000000e+00> : vector<16xf32>
    %87 = vector.multi_reduction <add>, %86, %cst_62 [1] : vector<16x128xf32> to vector<16xf32>
    %88 = vector.shape_cast %87 : vector<16xf32> to vector<16x1xf32>
    %cst_63 = arith.constant 1.280000e+02 : f32
    %89 = vector.broadcast %cst_63 : f32 to vector<16x1xf32>
    %90 = arith.divf %88, %89 : vector<16x1xf32>
    %91 = vector.broadcast %90 : vector<16x1xf32> to vector<16x128xf32>
    %92 = arith.subf %86, %91 : vector<16x128xf32>
    %93 = arith.mulf %92, %92 : vector<16x128xf32>
    %cst_64 = arith.constant dense<0.000000e+00> : vector<16xf32>
    %94 = vector.multi_reduction <add>, %93, %cst_64 [1] : vector<16x128xf32> to vector<16xf32>
    %95 = vector.shape_cast %94 : vector<16xf32> to vector<16x1xf32>
    %cst_65 = arith.constant 1.280000e+02 : f32
    %96 = vector.broadcast %cst_65 : f32 to vector<16x1xf32>
    %97 = arith.divf %95, %96 : vector<16x1xf32>
    %cst_66 = arith.constant 9.99999974E-6 : f32
    %98 = vector.broadcast %cst_66 : f32 to vector<16x1xf32>
    %99 = arith.addf %97, %98 : vector<16x1xf32>
    %100 = math.rsqrt %99 : vector<16x1xf32>
    %101 = vector.broadcast %100 : vector<16x1xf32> to vector<16x128xf32>
    %102 = arith.mulf %92, %101 : vector<16x128xf32>
    %103 = vector.broadcast %84 : vector<1x128xf32> to vector<16x128xf32>
    %104 = arith.mulf %102, %103 : vector<16x128xf32>
    %105 = vector.broadcast %85 : vector<1x128xf32> to vector<16x128xf32>
    %106 = arith.addf %104, %105 : vector<16x128xf32>
    %cst_67 = arith.constant 0.000000e+00 : f32
    %107 = vector.broadcast %cst_67 : f32 to vector<16x128xf32>
    %108 = arith.maximumf %106, %107 : vector<16x128xf32>
    %c0_68 = arith.constant 0 : index
    %c0_69 = arith.constant 0 : index
    %109 = vector.load %arg14[%c0_68, %c0_69] : memref<16x128xf32, #tpu.memory_space<vmem>>, vector<16x128xf32>
    %110 = arith.addf %108, %109 : vector<16x128xf32>
    %cst_70 = arith.constant 0.707106769 : f32
    %111 = vector.broadcast %cst_70 : f32 to vector<16x128xf32>
    %112 = arith.mulf %110, %111 : vector<16x128xf32>
    %c0_71 = arith.constant 0 : index
    %c0_72 = arith.constant 0 : index
    %113 = vector.load %arg13[%c0_71, %c0_72] : memref<16x512xf32, #tpu.memory_space<vmem>>, vector<16x128xf32>
    tpu.vector_store %arg13[%c0_71, %c0_72], %112 {strides = array<i32>} : memref<16x512xf32, #tpu.memory_space<vmem>>, vector<16x128xf32>,
    %c0_73 = arith.constant 0 : index
    %c128 = arith.constant 128 : index
    %114 = vector.load %arg13[%c0_73, %c128] : memref<16x512xf32, #tpu.memory_space<vmem>>, vector<16x128xf32>
    %cst_74 = arith.constant dense<0.000000e+00> : vector<16xf32>
    %115 = vector.multi_reduction <add>, %114, %cst_74 [1] : vector<16x128xf32> to vector<16xf32>
    %116 = vector.shape_cast %115 : vector<16xf32> to vector<16x1xf32>
    %cst_75 = arith.constant 1.280000e+02 : f32
    %117 = vector.broadcast %cst_75 : f32 to vector<16x1xf32>
    %118 = arith.divf %116, %117 : vector<16x1xf32>
    %119 = vector.broadcast %118 : vector<16x1xf32> to vector<16x128xf32>
    %120 = arith.subf %114, %119 : vector<16x128xf32>
    %121 = arith.mulf %120, %120 : vector<16x128xf32>
    %cst_76 = arith.constant dense<0.000000e+00> : vector<16xf32>
    %122 = vector.multi_reduction <add>, %121, %cst_76 [1] : vector<16x128xf32> to vector<16xf32>
    %123 = vector.shape_cast %122 : vector<16xf32> to vector<16x1xf32>
    %cst_77 = arith.constant 1.280000e+02 : f32
    %124 = vector.broadcast %cst_77 : f32 to vector<16x1xf32>
    %125 = arith.divf %123, %124 : vector<16x1xf32>
    %cst_78 = arith.constant 9.99999974E-6 : f32
    %126 = vector.broadcast %cst_78 : f32 to vector<16x1xf32>
    %127 = arith.addf %125, %126 : vector<16x1xf32>
    %128 = math.rsqrt %127 : vector<16x1xf32>
    %129 = vector.broadcast %128 : vector<16x1xf32> to vector<16x128xf32>
    %130 = arith.mulf %120, %129 : vector<16x128xf32>
    %131 = vector.broadcast %84 : vector<1x128xf32> to vector<16x128xf32>
    %132 = arith.mulf %130, %131 : vector<16x128xf32>
    %133 = vector.broadcast %85 : vector<1x128xf32> to vector<16x128xf32>
    %134 = arith.addf %132, %133 : vector<16x128xf32>
    %cst_79 = arith.constant 0.000000e+00 : f32
    %135 = vector.broadcast %cst_79 : f32 to vector<16x128xf32>
    %136 = arith.maximumf %134, %135 : vector<16x128xf32>
    %c0_80 = arith.constant 0 : index
    %c0_81 = arith.constant 0 : index
    %137 = vector.load %arg14[%c0_80, %c0_81] : memref<16x128xf32, #tpu.memory_space<vmem>>, vector<16x128xf32>
    %138 = arith.addf %136, %137 : vector<16x128xf32>
    %cst_82 = arith.constant 0.707106769 : f32
    %139 = vector.broadcast %cst_82 : f32 to vector<16x128xf32>
    %140 = arith.mulf %138, %139 : vector<16x128xf32>
    %c0_83 = arith.constant 0 : index
    %c128_84 = arith.constant 128 : index
    %141 = vector.load %arg13[%c0_83, %c128_84] : memref<16x512xf32, #tpu.memory_space<vmem>>, vector<16x128xf32>
    tpu.vector_store %arg13[%c0_83, %c128_84], %140 {strides = array<i32>} : memref<16x512xf32, #tpu.memory_space<vmem>>, vector<16x128xf32>,
    %c0_85 = arith.constant 0 : index
    %c256 = arith.constant 256 : index
    %142 = vector.load %arg13[%c0_85, %c256] : memref<16x512xf32, #tpu.memory_space<vmem>>, vector<16x128xf32>
    %cst_86 = arith.constant dense<0.000000e+00> : vector<16xf32>
    %143 = vector.multi_reduction <add>, %142, %cst_86 [1] : vector<16x128xf32> to vector<16xf32>
    %144 = vector.shape_cast %143 : vector<16xf32> to vector<16x1xf32>
    %cst_87 = arith.constant 1.280000e+02 : f32
    %145 = vector.broadcast %cst_87 : f32 to vector<16x1xf32>
    %146 = arith.divf %144, %145 : vector<16x1xf32>
    %147 = vector.broadcast %146 : vector<16x1xf32> to vector<16x128xf32>
    %148 = arith.subf %142, %147 : vector<16x128xf32>
    %149 = arith.mulf %148, %148 : vector<16x128xf32>
    %cst_88 = arith.constant dense<0.000000e+00> : vector<16xf32>
    %150 = vector.multi_reduction <add>, %149, %cst_88 [1] : vector<16x128xf32> to vector<16xf32>
    %151 = vector.shape_cast %150 : vector<16xf32> to vector<16x1xf32>
    %cst_89 = arith.constant 1.280000e+02 : f32
    %152 = vector.broadcast %cst_89 : f32 to vector<16x1xf32>
    %153 = arith.divf %151, %152 : vector<16x1xf32>
    %cst_90 = arith.constant 9.99999974E-6 : f32
    %154 = vector.broadcast %cst_90 : f32 to vector<16x1xf32>
    %155 = arith.addf %153, %154 : vector<16x1xf32>
    %156 = math.rsqrt %155 : vector<16x1xf32>
    %157 = vector.broadcast %156 : vector<16x1xf32> to vector<16x128xf32>
    %158 = arith.mulf %148, %157 : vector<16x128xf32>
    %159 = vector.broadcast %84 : vector<1x128xf32> to vector<16x128xf32>
    %160 = arith.mulf %158, %159 : vector<16x128xf32>
    %161 = vector.broadcast %85 : vector<1x128xf32> to vector<16x128xf32>
    %162 = arith.addf %160, %161 : vector<16x128xf32>
    %cst_91 = arith.constant 0.000000e+00 : f32
    %163 = vector.broadcast %cst_91 : f32 to vector<16x128xf32>
    %164 = arith.maximumf %162, %163 : vector<16x128xf32>
    %c0_92 = arith.constant 0 : index
    %c0_93 = arith.constant 0 : index
    %165 = vector.load %arg14[%c0_92, %c0_93] : memref<16x128xf32, #tpu.memory_space<vmem>>, vector<16x128xf32>
    %166 = arith.addf %164, %165 : vector<16x128xf32>
    %cst_94 = arith.constant 0.707106769 : f32
    %167 = vector.broadcast %cst_94 : f32 to vector<16x128xf32>
    %168 = arith.mulf %166, %167 : vector<16x128xf32>
    %c0_95 = arith.constant 0 : index
    %c256_96 = arith.constant 256 : index
    %169 = vector.load %arg13[%c0_95, %c256_96] : memref<16x512xf32, #tpu.memory_space<vmem>>, vector<16x128xf32>
    tpu.vector_store %arg13[%c0_95, %c256_96], %168 {strides = array<i32>} : memref<16x512xf32, #tpu.memory_space<vmem>>, vector<16x128xf32>,
    %c0_97 = arith.constant 0 : index
    %c384 = arith.constant 384 : index
    %170 = vector.load %arg13[%c0_97, %c384] : memref<16x512xf32, #tpu.memory_space<vmem>>, vector<16x128xf32>
    %cst_98 = arith.constant dense<0.000000e+00> : vector<16xf32>
    %171 = vector.multi_reduction <add>, %170, %cst_98 [1] : vector<16x128xf32> to vector<16xf32>
    %172 = vector.shape_cast %171 : vector<16xf32> to vector<16x1xf32>
    %cst_99 = arith.constant 1.280000e+02 : f32
    %173 = vector.broadcast %cst_99 : f32 to vector<16x1xf32>
    %174 = arith.divf %172, %173 : vector<16x1xf32>
    %175 = vector.broadcast %174 : vector<16x1xf32> to vector<16x128xf32>
    %176 = arith.subf %170, %175 : vector<16x128xf32>
    %177 = arith.mulf %176, %176 : vector<16x128xf32>
    %cst_100 = arith.constant dense<0.000000e+00> : vector<16xf32>
    %178 = vector.multi_reduction <add>, %177, %cst_100 [1] : vector<16x128xf32> to vector<16xf32>
    %179 = vector.shape_cast %178 : vector<16xf32> to vector<16x1xf32>
    %cst_101 = arith.constant 1.280000e+02 : f32
    %180 = vector.broadcast %cst_101 : f32 to vector<16x1xf32>
    %181 = arith.divf %179, %180 : vector<16x1xf32>
    %cst_102 = arith.constant 9.99999974E-6 : f32
    %182 = vector.broadcast %cst_102 : f32 to vector<16x1xf32>
    %183 = arith.addf %181, %182 : vector<16x1xf32>
    %184 = math.rsqrt %183 : vector<16x1xf32>
    %185 = vector.broadcast %184 : vector<16x1xf32> to vector<16x128xf32>
    %186 = arith.mulf %176, %185 : vector<16x128xf32>
    %187 = vector.broadcast %84 : vector<1x128xf32> to vector<16x128xf32>
    %188 = arith.mulf %186, %187 : vector<16x128xf32>
    %189 = vector.broadcast %85 : vector<1x128xf32> to vector<16x128xf32>
    %190 = arith.addf %188, %189 : vector<16x128xf32>
    %cst_103 = arith.constant 0.000000e+00 : f32
    %191 = vector.broadcast %cst_103 : f32 to vector<16x128xf32>
    %192 = arith.maximumf %190, %191 : vector<16x128xf32>
    %c0_104 = arith.constant 0 : index
    %c0_105 = arith.constant 0 : index
    %193 = vector.load %arg14[%c0_104, %c0_105] : memref<16x128xf32, #tpu.memory_space<vmem>>, vector<16x128xf32>
    %194 = arith.addf %192, %193 : vector<16x128xf32>
    %cst_106 = arith.constant 0.707106769 : f32
    %195 = vector.broadcast %cst_106 : f32 to vector<16x128xf32>
    %196 = arith.mulf %194, %195 : vector<16x128xf32>
    %c0_107 = arith.constant 0 : index
    %c384_108 = arith.constant 384 : index
    %197 = vector.load %arg13[%c0_107, %c384_108] : memref<16x512xf32, #tpu.memory_space<vmem>>, vector<16x128xf32>
    tpu.vector_store %arg13[%c0_107, %c384_108], %196 {strides = array<i32>} : memref<16x512xf32, #tpu.memory_space<vmem>>, vector<16x128xf32>,
    %c0_109 = arith.constant 0 : index
    %c0_110 = arith.constant 0 : index
    %198 = vector.load %arg9[%c0_109, %c0_110] : memref<512x32xf32, #tpu.memory_space<vmem>>, vector<512x32xf32>
    %c0_111 = arith.constant 0 : index
    %c0_112 = arith.constant 0 : index
    %199 = vector.load %arg13[%c0_111, %c0_112] : memref<16x512xf32, #tpu.memory_space<vmem>>, vector<16x512xf32>
    %cst_113 = arith.constant dense<0.000000e+00> : vector<16x32xf32>
    %200 = tpu.matmul %199, %198, %cst_113 {dimension_numbers = #tpu.dot_dimension_numbers<[1], [0], [0], [1], [0, 0, 1, 1], [], []>} : vector<16x512xf32>, vector<512x32xf32>, vector<16x32xf32> -> vector<16x32xf32>
    %201 = arith.addf %200, %83 : vector<16x32xf32>
    %202 = vector.shape_cast %201 : vector<16x32xf32> to vector<1x16x32xf32>
    %c0_114 = arith.constant 0 : index
    %c0_115 = arith.constant 0 : index
    %c0_116 = arith.constant 0 : index
    %203 = vector.load %arg12[%c0_114, %c0_115, %c0_116] : memref<1x16x32xf32, #tpu.memory_space<vmem>>, vector<1x16x32xf32>
    tpu.vector_store %arg12[%c0_114, %c0_115, %c0_116], %202 {strides = array<i32>} : memref<1x16x32xf32, #tpu.memory_space<vmem>>, vector<1x16x32xf32>,
    return
  }
  func.func @transform_0(%arg0: i32, %arg1: i32) -> (i32, i32, i32) {
    %c0_i32 = arith.constant 0 : i32
    %c0_i32_0 = arith.constant 0 : i32
    %c0_i32_1 = arith.constant 0 : i32
    return %arg0, %c0_i32, %c0_i32_0 : i32, i32, i32
  }
  func.func @transform_1(%arg0: i32, %arg1: i32) -> (i32, i32, i32) {
    %c0_i32 = arith.constant 0 : i32
    %c0_i32_0 = arith.constant 0 : i32
    %c0_i32_1 = arith.constant 0 : i32
    %c0_i32_2 = arith.constant 0 : i32
    return %c0_i32, %c0_i32_0, %c0_i32_1 : i32, i32, i32
  }
  func.func @transform_2(%arg0: i32, %arg1: i32) -> (i32, i32) {
    %c0_i32 = arith.constant 0 : i32
    %c0_i32_0 = arith.constant 0 : i32
    %c0_i32_1 = arith.constant 0 : i32
    return %c0_i32, %c0_i32_0 : i32, i32
  }
  func.func @transform_3(%arg0: i32, %arg1: i32) -> (i32, i32) {
    %c0_i32 = arith.constant 0 : i32
    %c0_i32_0 = arith.constant 0 : i32
    %c0_i32_1 = arith.constant 0 : i32
    return %c0_i32, %c0_i32_0 : i32, i32
  }
  func.func @transform_4(%arg0: i32, %arg1: i32) -> (i32, i32) {
    %c0_i32 = arith.constant 0 : i32
    %c0_i32_0 = arith.constant 0 : i32
    %c0_i32_1 = arith.constant 0 : i32
    return %c0_i32, %c0_i32_0 : i32, i32
  }
  func.func @transform_5(%arg0: i32, %arg1: i32) -> (i32, i32) {
    %c0_i32 = arith.constant 0 : i32
    %c0_i32_0 = arith.constant 0 : i32
    %c0_i32_1 = arith.constant 0 : i32
    return %c0_i32, %c0_i32_0 : i32, i32
  }
  func.func @transform_6(%arg0: i32, %arg1: i32) -> (i32, i32) {
    %c0_i32 = arith.constant 0 : i32
    %c0_i32_0 = arith.constant 0 : i32
    %c0_i32_1 = arith.constant 0 : i32
    return %c0_i32, %c0_i32_0 : i32, i32
  }
  func.func @transform_7(%arg0: i32, %arg1: i32) -> (i32, i32) {
    %c0_i32 = arith.constant 0 : i32
    %c0_i32_0 = arith.constant 0 : i32
    %c0_i32_1 = arith.constant 0 : i32
    return %c0_i32, %c0_i32_0 : i32, i32
  }
  func.func @transform_8(%arg0: i32, %arg1: i32) -> (i32, i32) {
    %c0_i32 = arith.constant 0 : i32
    %c0_i32_0 = arith.constant 0 : i32
    %c0_i32_1 = arith.constant 0 : i32
    return %c0_i32, %c0_i32_0 : i32, i32
  }
  func.func @transform_9(%arg0: i32, %arg1: i32) -> (i32, i32) {
    %c0_i32 = arith.constant 0 : i32
    %c0_i32_0 = arith.constant 0 : i32
    %c0_i32_1 = arith.constant 0 : i32
    return %c0_i32, %c0_i32_0 : i32, i32
  }
  func.func @transform_10(%arg0: i32, %arg1: i32) -> (i32, i32, i32) {
    %c0_i32 = arith.constant 0 : i32
    %c0_i32_0 = arith.constant 0 : i32
    return %arg0, %arg1, %c0_i32 : i32, i32, i32
  }
}

</mosaic_0001>

<bundles_post_ra>
// kernel: cnn_encoder_forward.1
= control target key start
LH: loop header
LB: loop body
LE: loop exit
PB: predicated region body
PF: predicated region fallthrough
CT: control target
= control target key end

     0   :  { %s3228_s0 = inlined_call_operand.vmem [shape: s32[2,20,1], index: 0, kind: input, shape index: {}]   ;;  %s3229_s1 = inlined_call_operand.vmem [shape: f32[5,16,512], index: 1, kind: input, shape index: {}]   ;;  %s3230_s2 = inlined_call_operand.vmem [shape: f32[1,512], index: 2, kind: input, shape index: {}]   ;;  %s3231_s3 = inlined_call_operand.vmem [shape: f32[16,128], index: 3, kind: input, shape index: {}]   ;;  %s3232_s4 = inlined_call_operand.vmem [shape: f32[1,128], index: 4, kind: input, shape index: {}]   ;;  %s3233_s5 = inlined_call_operand.vmem [shape: f32[1,128], index: 5, kind: input, shape index: {}]   ;;  %s3234_s6 = inlined_call_operand.vmem [shape: f32[1,128], index: 6, kind: input, shape index: {}]   ;;  %s3235_s7 = inlined_call_operand.vmem [shape: f32[512,32], index: 7, kind: input, shape index: {}]   ;;  %s3236_s8 = inlined_call_operand.vmem [shape: f32[16,32], index: 8, kind: input, shape index: {}]   ;;  %s3237_s9 = inlined_call_operand.vmem [shape: f32[1,32], index: 9, kind: input, shape index: {}]   ;;  %s3238_s10 = inlined_call_operand.hbm [shape: f32[2,16,32], index: 10, kind: output, shape index: {}]  }
   0x1   :  { %3240 = sst [smem:[#allocation8_spill]] %s3228_s0 }
   0x2   :  { %15 = vsyncpa [#allocation5], 0 }
   0x3   :  { %17 = vsyncpa [#allocation5 + $0x1], 0  ;;  %s2650_s13 = smov 0   ;;  %s2652_s14 = smov 0  }
   0x4   :  { %s2654_s15 = smov 0   ;;  %s2656_s16 = smov 0  }
   0x5   :  { %s2658_s17 = smov 0   ;;  %s2660_s18 = smov 0  }
   0x6 LB: > { %s2091_s19 = sadd.s32 4294967295, %s2588_s18   ;;  %s2092_s20 = sadd.s32 4294967294, %s2588_s18   ;;  %s2588_s18 = sphi %s2660_s18, %s23_s18   ;;  %s2584_s17 = sphi %s2658_s17, %s3250_s17   ;;  %s2580_s16 = sphi %s2656_s16, %s3249_s16   ;;  %s2576_s15 = sphi %s2654_s15, %s3248_s15   ;;  %s2572_s14 = sphi %s2652_s14, %s3247_s14   ;;  %s2568_s13 = sphi %s2650_s13, %s3246_s13  }
   0x7   : > { %s35_s21 = sadd.s32 1, %s2584_s17  ;;  %s259_s22 = sadd.s32 1, %s2576_s15 }
   0x8   : > { %p37_p0 = scmp.ge.s32.totalorder %s35_s21, 2  ;;  %p269_p1 = scmp.ne.s32.totalorder %s2576_s15, %s2572_s14 }
   0x9   : > { %p270_p2 = scmp.eq.s32.totalorder %s2091_s19, 1  ;;  %p275_p3 = scmp.ne.s32.totalorder %s2572_s14, %s2568_s13 }
   0xa   : > { %s3252_s21 = smov (%p37_p0, %s35_s21), 0  ;;  %p276_p5 = scmp.eq.s32.totalorder %s2092_s20, 1 }
   0xb   : > { %3241 = sst [smem:[#allocation7_spill]] %s3252_s21  ;;  %p2690_p4 = por %p270_p2, %p269_p1 }
   0xc   : > { %s254_s24 = ssub.s32 %s2584_s17, %s3252_s21  ;;  %p2095_p6 = scmp.ge.s32.totalorder %s2588_s18, 1 }
   0xd   : > { %p257_p7 = scmp.eq.s32.totalorder %s254_s24, 0  ;;  %p2697_p8 = por %p276_p5, %p275_p3 }
   0xe   : > { %p329_p9 = scmp.lt.s32.totalorder %s2588_s18, 3 }
   0xf   : > { %s2703_s26 = scalar_select %p257_p7, %s2576_s15, %s259_s22  }
  0x10   : > { %p330_p10 = pnand %p2095_p6, %p329_p9 }
  0x11   : > { %p367_p11 = scmp.lt.s32.totalorder (!%p330_p10), %s2580_s16, 1  ;;  %v394_v0 = vld [vmem:[%s3229_s1 + $0x18] sm:$0xff] (!%p330_p10)  ;;  %v392_v2 = vld [vmem:[%s3229_s1 + $0x8] sm:$0xff] (!%p330_p10)  ;;  %v2590_v3 = vmov (!%p330_p10), 0   ;;  %v393_v6 = vld [vmem:[%s3229_s1 + $0x10] sm:$0xff] (!%p330_p10)  ;;  %v2591_v12 = vmov (!%p330_p10), 0.0   ;;  %v374_v30 = vlaneseq (!%p330_p10) }
  0x12   : > { %333 = sbr.rel (%p330_p10) target bundleno = 975 (0x3cf), region = 60  ;;  %v398_v1 = vld [vmem:[%s3229_s1 + $0x38] sm:$0xff] (!%p330_p10)  ;;  %2493 = vset.pattern.permute.xlu1 (!%p330_p10), %v2590_v3  ;;  %2492 = vset.pattern.permute.xlu0 (!%p330_p10), %v2590_v3  ;;  %v396_v5 = vld [vmem:[%s3229_s1 + $0x28] sm:$0xff] (!%p330_p10)  ;;  %v397_v7 = vld [vmem:[%s3229_s1 + $0x30] sm:$0xff] (!%p330_p10)  ;;  %s3244_s0 = sld [smem:[#allocation8_spill]] (!%p330_p10)  ;;  %vm421_vm0 = vcmask (!%p330_p10), 130048  }
  0x13   : > { %v2284_v4 = vpack.c.bf16 (!%p330_p10), %v398_v1, %v394_v0  ;;  %v2280_v8 = vpack.c.bf16 (!%p330_p10), %v396_v5, %v392_v2  ;;  %v2286_v9 = vpack.c.bf16 (!%p330_p10), %v397_v7, %v393_v6  ;;  %v391_v10 = vld [vmem:[%s3229_s1] sm:$0xff] (!%p330_p10)  ;;  %492 = vmatprep.mubr.f32.mxu0 (!%p330_p10), %v2591_v12  ;;  %569 = vmatprep.mubr.f32.mxu1 (!%p330_p10), %v2591_v12  ;;  %v2111_v18 = vld [vmem:[%s3229_s1 + $0x58] sm:$0xff] (!%p330_p10)  ;;  %v2109_v21 = vld [vmem:[%s3229_s1 + $0x48] sm:$0xff] (!%p330_p10)  ;;  %v2749_v31 = vand.u32 (!%p330_p10), 127, %v374_v30  ;;  %s364_s12 = sand.u32 (!%p330_p10), 1, %s2572_s14   ;;  %s2181_s21 = sshll.u32 (!%p330_p10), %s2580_s16, 8 }
  0x14   : > { %v395_v11 = vld [vmem:[%s3229_s1 + $0x20] sm:$0xff] (!%p330_p10)  ;;  %v2115_v19 = vld [vmem:[%s3229_s1 + $0x78] sm:$0xff] (!%p330_p10)  ;;  %v2113_v22 = vld [vmem:[%s3229_s1 + $0x68] sm:$0xff] (!%p330_p10)  ;;  %vm1985_vm11 = vcmask (!%p330_p10), 261120   ;;  %s3177_s28 = scalar_lea.hbm (!%p330_p10), %s3238_s10, %s2181_s21  ;;  %s3182_s30 = scalar_lea.sflag (!%p330_p10), [#allocation5], %s364_s12 }
  0x15   : > { %2285 = vmatprep.subr.bf16.mxu1 (!%p330_p10), %v2284_v4  ;;  %v2282_v13 = vpack.c.bf16 (!%p330_p10), %v395_v11, %v391_v10  ;;  %2281 = vmatprep.subr.bf16.mxu0 (!%p330_p10), %v2280_v8  ;;  %v2292_v20 = vpack.c.bf16 (!%p330_p10), %v2115_v19, %v2111_v18  ;;  %v2288_v25 = vpack.c.bf16 (!%p330_p10), %v2113_v22, %v2109_v21  ;;  %v2110_v32 = vld [vmem:[%s3229_s1 + $0x50] sm:$0xff] (!%p330_p10)  ;;  %v2108_v34 = vld [vmem:[%s3229_s1 + $0x40] sm:$0xff] (!%p330_p10)  ;;  %v2127_v36 = vld [vmem:[%s3229_s1 + $0x98] sm:$0xff] (!%p330_p10) }
  0x16   : > { %2287 = vmatpush1.bf16.msra.mxu1 (!%p330_p10), %v2286_v9  ;;  %v2114_v33 = vld [vmem:[%s3229_s1 + $0x70] sm:$0xff] (!%p330_p10)  ;;  %v2112_v35 = vld [vmem:[%s3229_s1 + $0x60] sm:$0xff] (!%p330_p10)  ;;  %v2131_v37 = vld [vmem:[%s3229_s1 + $0xb8] sm:$0xff] (!%p330_p10) }
  0x17   : > { %2283 = vmatpush1.bf16.msra.mxu0 (!%p330_p10), %v2282_v13  ;;  %2293 = vmatprep.subr.bf16.mxu1 (!%p330_p10), %v2292_v20  ;;  %v2125_v38 = vld [vmem:[%s3229_s1 + $0x88] sm:$0xff] (!%p330_p10)  ;;  %v2294_v41 = vpack.c.bf16 (!%p330_p10), %v2114_v33, %v2110_v32  ;;  %v2290_v42 = vpack.c.bf16 (!%p330_p10), %v2112_v35, %v2108_v34  ;;  %v2300_v44 = vpack.c.bf16 (!%p330_p10), %v2131_v37, %v2127_v36  ;;  %v2126_v48 = vld [vmem:[%s3229_s1 + $0x90] sm:$0xff] (!%p330_p10)  ;;  %v2124_v51 = vld [vmem:[%s3229_s1 + $0x80] sm:$0xff] (!%p330_p10) }
  0x18   : > { %2289 = vmatprep.subr.bf16.mxu0 (!%p330_p10), %v2288_v25  ;;  %v2129_v39 = vld [vmem:[%s3229_s1 + $0xa8] sm:$0xff] (!%p330_p10)  ;;  %v2130_v49 = vld [vmem:[%s3229_s1 + $0xb0] sm:$0xff] (!%p330_p10)  ;;  %v2128_v52 = vld [vmem:[%s3229_s1 + $0xa0] sm:$0xff] (!%p330_p10) }
  0x19   : > { %s368_s29 = scalar_select %p367_p11, %s2580_s16, 1  ;;  %v2296_v45 = vpack.c.bf16 %v2129_v39, %v2125_v38  ;;  %v2143_v53 = vld [vmem:[%s3229_s1 + $0xd8] sm:$0xff]  ;;  %v2141_v55 = vld [vmem:[%s3229_s1 + $0xc8] sm:$0xff]  ;;  %v2302_v58 = vpack.c.bf16 %v2130_v49, %v2126_v48  ;;  %v2298_v59 = vpack.c.bf16 %v2128_v52, %v2124_v51  ;;  %v2142_v0 = vld [vmem:[%s3229_s1 + $0xd0] sm:$0xff] }
  0x1a   : > { %v2147_v54 = vld [vmem:[%s3229_s1 + $0xf8] sm:$0xff]  ;;  %v2145_v56 = vld [vmem:[%s3229_s1 + $0xe8] sm:$0xff]  ;;  %v2146_v1 = vld [vmem:[%s3229_s1 + $0xf0] sm:$0xff]  ;;  %s2592_s16 = smov [#allocation4]  }
  0x1b   : > { %s2432_s19 = smul.u32 24, %s368_s29  ;;  %v2308_v61 = vpack.c.bf16 %v2147_v54, %v2143_v53  ;;  %v2304_v62 = vpack.c.bf16 %v2145_v56, %v2141_v55  ;;  %v2140_v3 = vld [vmem:[%s3229_s1 + $0xc0] sm:$0xff]  ;;  %v2159_v5 = vld [vmem:[%s3229_s1 + $0x118] sm:$0xff]  ;;  %v2157_v7 = vld [vmem:[%s3229_s1 + $0x108] sm:$0xff]  ;;  %v2310_v10 = vpack.c.bf16 %v2146_v1, %v2142_v0 }
  0x1c   : > { %v2144_v4 = vld [vmem:[%s3229_s1 + $0xe0] sm:$0xff]  ;;  %v2163_v6 = vld [vmem:[%s3229_s1 + $0x138] sm:$0xff]  ;;  %v2161_v8 = vld [vmem:[%s3229_s1 + $0x128] sm:$0xff] }
  0x1d   : > { %s371_s24 = scalar_lea.vmem %s3244_s0, %s2432_s19  ;;  %v2306_v11 = vpack.c.bf16 %v2144_v4, %v2140_v3  ;;  %v2162_v18 = vld [vmem:[%s3229_s1 + $0x130] sm:$0xff]  ;;  %v2156_v20 = vld [vmem:[%s3229_s1 + $0x100] sm:$0xff]  ;;  %v1513_v25 = vld [vmem:[%s3236_s8 + $0x8] sm:$0xff]  ;;  %s2096_s19 = sshll.u32 %s364_s12, 4 }
  0x1e   : > { %v2104_v14 = vld [vmem:[%s371_s24 + $0x1] sm:$0xff]  ;;  %v2105_v16 = vld [vmem:[%s371_s24 + $0x9] sm:$0xff]  ;;  %s366_s20 = scalar_lea.vmem [#allocation4], %s2096_s19 }
  0x1f   : > { %v377_v15 = vld [vmem:[%s371_s24] sm:$0xff]  ;;  %595 = vperm.xlu1 %2493, %v2104_v14   ;;  %v378_v17 = vld [vmem:[%s371_s24 + $0x8] sm:$0xff]  ;;  %v2316_v14 = vpack.c.bf16 %v2163_v6, %v2159_v5  ;;  %s2004_s22 = sshll.u32 %s366_s20, 4  ;;  %s3179_s22 = int_to_ptr.vmem [resolvable:$true] %s2004_s22 }
  0x20   : > { %380 = vperm.xlu0 %2492, %v377_v15   ;;  %v2121_v23 = vld [vmem:[%s371_s24 + $0xa] sm:$0xff]  ;;  %v2120_v24 = vld [vmem:[%s371_s24 + $0x2] sm:$0xff]  ;;  %v2312_v15 = vpack.c.bf16 %v2161_v8, %v2157_v7  ;;  %s2510_s29 = scalar_lea.vmem %s3179_s22, 256 }
  0x21   : > { %v2137_v26 = vld [vmem:[%s371_s24 + $0xb] sm:$0xff]  ;;  %v2136_v27 = vld [vmem:[%s371_s24 + $0x3] sm:$0xff]  ;;  %p2511_p12 = scmp.ne.s32.totalorder %s3179_s22, %s2510_s29 }
  0x22   : > { %v2153_v28 = vld [vmem:[%s371_s24 + $0xc] sm:$0xff]  ;;  %v2152_v29 = vld [vmem:[%s371_s24 + $0x4] sm:$0xff]  ;;  %s2514_s24 = sshll.u32 %s2592_s16, 4  ;;  %s2515_s24 = int_to_ptr.vmem [resolvable:$false] %s2514_s24 }
  0x23   : > { %598 = vperm.xlu1 %2493, %v2105_v16   ;;  %v2160_v21 = vld [vmem:[%s3229_s1 + $0x120] sm:$0xff]  ;;  %p2512_p13 = pnand %p2511_p12, %p2690_p4  ;;  %s2516_s11 = scalar_lea.vmem %s2515_s24, 512 }
  0x24   : > { %383 = vperm.xlu0 %2492, %v378_v17   ;;  %v2158_v17 = vld [vmem:[%s3229_s1 + $0x110] sm:$0xff]  ;;  %v1426_v22 = vld [vmem:[%s3231_s3] sm:$0xff]  ;;  %p2517_p1 = scmp.lt.s32.totalorder %s3179_s22, %s2515_s24  ;;  %p2518_p2 = scmp.lt.s32.totalorder %s2516_s11, %s2510_s29 }
  0x25   : > { %p2513_p0 = pneg %p2512_p13 }
  0x26   : > { %p2519_p3 = por %p2518_p2, %p2517_p1 }
  0x27   : > { %807 = vperm.xlu1 %2493, %v2121_v23   ;;  %v1427_v23 = vld [vmem:[%s3231_s3 + $0x8] sm:$0xff] }
  0x28   : > { %804 = vperm.xlu0 %2492, %v2120_v24   ;;  %v1512_v24 = vld [vmem:[%s3236_s8] sm:$0xff]  ;;  %v2320_v32 = vpack.c.bf16 %v1427_v23, %v1426_v22  ;;  %p2520_p5 = pnand %p2519_p3, %p2513_p0 }
  0x29   : > { %v2324_v33 = vpack.c.bf16 %v1513_v25, %v1512_v24 }
  0x2b   : > { %1016 = vperm.xlu1 %2493, %v2137_v26  }
  0x2c   : > { %1013 = vperm.xlu0 %2492, %v2136_v27   ;;  %v2318_v27 = vpack.c.bf16 %v2162_v18, %v2158_v17 }
  0x2f   : > { %1225 = vperm.xlu1 %2493, %v2153_v28   ;;  %v2314_v28 = vpack.c.bf16 %v2160_v21, %v2156_v20 }
  0x30   : > { %1222 = vperm.xlu0 %2492, %v2152_v29  }
  0x9e   : > { %v596_v46 = vpop.permute.xlu1 %595 }
  0x9f   : > { %v381_v40 = vpop.permute.xlu0 %380  ;;  %vm600_vm2 = vcmp.eq.s32.totalorder %v596_v46, %v2749_v31 }
  0xa0   : > { %vm385_vm1 = vcmp.eq.s32.totalorder %v381_v40, %v2749_v31  ;;  %v2106_v57 = vsel %vm600_vm2, 1.0, %v2591_v12 }
  0xa1   : > { %v2098_v43 = vsel %vm385_vm1, 1.0, %v2591_v12 }
  0xa2   : > { %2100 = vmatmul.mubr.msk.f32.vlgmr.msra.gmra.mrb[0].mxu0 %vm421_vm0, %v2098_v43  ;;  %2102 = vmatmul.mubr.msk.f32.vlgmr.msra.gmra.mrb[0].mxu1 %vm421_vm0, %v2098_v43  ;;  %v599_v60 = vpop.permute.xlu1 %598 }
  0xa3   : > { %2295 = vmatpush1.bf16.msra.mxu1 %v2294_v41  ;;  %v384_v47 = vpop.permute.xlu0 %383  ;;  %498 = vmatprep.mubr.f32.mxu0 %v2591_v12  ;;  %vm601_vm4 = vcmp.eq.s32.totalorder %v599_v60, %v2749_v31 }
  0xa4   : > { %vm386_vm3 = vcmp.eq.s32.totalorder %v384_v47, %v2749_v31  ;;  %575 = vmatprep.mubr.f32.mxu1 %v2591_v12  ;;  %2291 = vmatpush1.bf16.msra.mxu0 %v2290_v42  ;;  %v2107_v2 = vsel %vm601_vm4, 1.0, %v2591_v12 }
  0xa5   : > { %v2099_v50 = vsel %vm386_vm3, 1.0, %v2591_v12  ;;  %2301 = vmatprep.subr.bf16.mxu1 %v2300_v44  ;;  %2297 = vmatprep.subr.bf16.mxu0 %v2296_v45 }
  0xa6   : > { %2101 = vmatmul.mubr.msk.f32.gmra.mrb[2].mxu0 %vm421_vm0, %v2099_v50  ;;  %2103 = vmatmul.mubr.msk.f32.gmra.mrb[2].mxu1 %vm421_vm0, %v2099_v50  ;;  %v808_v9 = vpop.permute.xlu1 %807 }
  0xa7   : > { %685 = vmatprep.mubr.f32.mxu0 %v2591_v12  ;;  %762 = vmatprep.mubr.f32.mxu1 %v2591_v12  ;;  %v805_v63 = vpop.permute.xlu0 %804  ;;  %vm810_vm6 = vcmp.eq.s32.totalorder %v808_v9, %v2749_v31 }
  0xa8   : > { %vm809_vm5 = vcmp.eq.s32.totalorder %v805_v63, %v2749_v31  ;;  %v2123_v19 = vsel %vm810_vm6, 1.0, %v2591_v12 }
  0xa9   : > { %v2122_v13 = vsel %vm809_vm5, 1.0, %v2591_v12 }
  0xaa   : > { %2116 = vmatmul.mubr.msk.f32.vlgmr.msra.gmra.mrb[0].mxu0 %vm421_vm0, %v2106_v57  ;;  %2118 = vmatmul.mubr.msk.f32.vlgmr.msra.gmra.mrb[0].mxu1 %vm421_vm0, %v2106_v57  ;;  %v1017_v26 = vpop.permute.xlu1 %1016 }
  0xab   : > { %2303 = vmatpush1.bf16.msra.mxu1 %v2302_v58  ;;  %691 = vmatprep.mubr.f32.mxu0 %v2591_v12  ;;  %v1014_v16 = vpop.permute.xlu0 %1013  ;;  %vm1019_vm8 = vcmp.eq.s32.totalorder %v1017_v26, %v2749_v31 }
  0xac   : > { %768 = vmatprep.mubr.f32.mxu1 %v2591_v12  ;;  %2299 = vmatpush1.bf16.msra.mxu0 %v2298_v59  ;;  %vm1018_vm7 = vcmp.eq.s32.totalorder %v1014_v16, %v2749_v31  ;;  %v2139_v35 = vsel %vm1019_vm8, 1.0, %v2591_v12 }
  0xad   : > { %2309 = vmatprep.subr.bf16.mxu1 %v2308_v61  ;;  %2305 = vmatprep.subr.bf16.mxu0 %v2304_v62  ;;  %v2138_v29 = vsel %vm1018_vm7, 1.0, %v2591_v12 }
  0xae   : > { %2117 = vmatmul.mubr.msk.f32.gmra.mrb[2].mxu0 %vm421_vm0, %v2107_v2  ;;  %2119 = vmatmul.mubr.msk.f32.gmra.mrb[2].mxu1 %vm421_vm0, %v2107_v2  ;;  %v1226_v36 = vpop.permute.xlu1 %1225 }
  0xaf   : > { %894 = vmatprep.mubr.f32.mxu0 %v2591_v12  ;;  %971 = vmatprep.mubr.f32.mxu1 %v2591_v12  ;;  %v1223_v34 = vpop.permute.xlu0 %1222  ;;  %vm1228_vm10 = vcmp.eq.s32.totalorder %v1226_v36, %v2749_v31 }
  0xb0   : > { %vm1227_vm9 = vcmp.eq.s32.totalorder %v1223_v34, %v2749_v31  ;;  %v2155_v38 = vsel %vm1228_vm10, 1.0, %v2591_v12  ;;  %v402_v31 = vshrl.u32 %v374_v30, 7  ;;  %v1779_v34 = vld [vmem:[%s3235_s7 + $0x80] sm:$0xff] }
  0xb1   : > { %v2154_v37 = vsel %vm1227_vm9, 1.0, %v2591_v12 }
  0xb2   : > { %2132 = vmatmul.mubr.msk.f32.vlgmr.msra.gmra.mrb[0].mxu0 %vm421_vm0, %v2122_v13  ;;  %2134 = vmatmul.mubr.msk.f32.vlgmr.msra.gmra.mrb[0].mxu1 %vm421_vm0, %v2122_v13  ;;  %v403_v39 = vsub.s32 0, %v402_v31  ;;  %v411_v40 = vsub.s32 2, %v402_v31  ;;  %v407_v41 = vsub.s32 1, %v402_v31  ;;  %v415_v42 = vsub.s32 3, %v402_v31  ;;  %v1764_v31 = vld [vmem:[%s3235_s7 + $0x8] sm:$0xff] }
  0xb3   : > { %2311 = vmatpush1.bf16.msra.mxu1 %v2310_v10  ;;  %900 = vmatprep.mubr.f32.mxu0 %v2591_v12 }
  0xb4   : > { %977 = vmatprep.mubr.f32.mxu1 %v2591_v12  ;;  %2307 = vmatpush1.bf16.msra.mxu0 %v2306_v11 }
  0xb5   : > { %2317 = vmatprep.subr.bf16.mxu1 %v2316_v14  ;;  %2313 = vmatprep.subr.bf16.mxu0 %v2312_v15 }
  0xb6   : > { %2133 = vmatmul.mubr.msk.f32.gmra.mrb[2].mxu0 %vm421_vm0, %v2123_v19  ;;  %2135 = vmatmul.mubr.msk.f32.gmra.mrb[2].mxu1 %vm421_vm0, %v2123_v19 }
  0xb7   : > { %1103 = vmatprep.mubr.f32.mxu0 %v2591_v12  ;;  %1180 = vmatprep.mubr.f32.mxu1 %v2591_v12 }
  0xba   : > { %2148 = vmatmul.mubr.msk.f32.vlgmr.msra.gmra.mrb[0].mxu0 %vm421_vm0, %v2138_v29  ;;  %2150 = vmatmul.mubr.msk.f32.vlgmr.msra.gmra.mrb[0].mxu1 %vm421_vm0, %v2138_v29 }
  0xbb   : > { %2319 = vmatpush1.bf16.msra.mxu1 %v2318_v27  ;;  %1109 = vmatprep.mubr.f32.mxu0 %v2591_v12 }
  0xbc   : > { %1186 = vmatprep.mubr.f32.mxu1 %v2591_v12  ;;  %2315 = vmatpush1.bf16.msra.mxu0 %v2314_v28 }
  0xbd   : > { %2321 = vmatprep.subr.bf16.mxu0 %v2320_v32  ;;  %2325 = vmatprep.subr.bf16.mxu1 %v2324_v33 }
  0xbe   : > { %2149 = vmatmul.mubr.msk.f32.gmra.mrb[2].mxu0 %vm421_vm0, %v2139_v35  ;;  %2151 = vmatmul.mubr.msk.f32.gmra.mrb[2].mxu1 %vm421_vm0, %v2139_v35  ;;  %v1780_v35 = vld [vmem:[%s3235_s7 + $0x88] sm:$0xff] }
  0xbf   : > { %1312 = vmatprep.mubr.f32.mxu0 %v2591_v12  ;;  %1389 = vmatprep.mubr.f32.mxu1 %v2591_v12 }
  0xc2   : > { %2164 = vmatmul.mubr.msk.f32.vlgmr.msra.gmra.mrb[0].mxu0 %vm421_vm0, %v2154_v37  ;;  %2166 = vmatmul.mubr.msk.f32.vlgmr.msra.gmra.mrb[0].mxu1 %vm421_vm0, %v2154_v37  ;;  %v2328_v37 = vpack.c.bf16 %v1780_v35, %v1779_v34  ;;  %v1801_v35 = vld [vmem:[%s3235_s7 + $0x130] sm:$0xff] }
  0xc3   : > { %1318 = vmatprep.mubr.f32.mxu0 %v2591_v12  ;;  %1395 = vmatprep.mubr.f32.mxu1 %v2591_v12  ;;  %v399_v12 = vld [vmem:[%s3230_s2] sm:$0xf] }
  0xc4   : > { %2323 = vmatpush3.bf16.msra.mxu0 %v2320_v32  ;;  %2327 = vmatpush3.bf16.msra.mxu1 %v2324_v33  ;;  %v404_v43 = vrot.slane %v399_v12, %v403_v39  ;;  %v412_v44 = vrot.slane %v399_v12, %v411_v40  ;;  %v408_v45 = vrot.slane %v399_v12, %v407_v41  ;;  %v1781_v41 = vld [vmem:[%s3235_s7 + $0x90] sm:$0xff] }
  0xc5   : > { %v416_v46 = vrot.slane %v399_v12, %v415_v42  ;;  %2329 = vmatprep.subr.bf16.mxu0 %v2328_v37  ;;  %v1782_v42 = vld [vmem:[%s3235_s7 + $0x98] sm:$0xff] }
  0xc6   : > { %2165 = vmatmul.mubr.msk.f32.gmra.mrb[2].mxu0 %vm421_vm0, %v2155_v38  ;;  %2167 = vmatmul.mubr.msk.f32.gmra.mrb[2].mxu1 %vm421_vm0, %v2155_v38  ;;  %v1763_v38 = vld [vmem:[%s3235_s7] sm:$0xff]  ;;  %v1802_v37 = vld [vmem:[%s3235_s7 + $0x138] sm:$0xff] }
  0xc7   : > { %2270 = vmatprep.mubr.msk.f32.mxu0 %vm421_vm0, %v2122_v13  ;;  %2277 = vmatprep.mubr.msk.f32.mxu1 %vm421_vm0, %v2122_v13  ;;  %v2330_v39 = vpack.c.bf16 %v1764_v31, %v1763_v38  ;;  %v2374_v38 = vpack.c.bf16 %v1802_v37, %v1801_v35  ;;  %v1789_v31 = vld [vmem:[%s3235_s7 + $0xd0] sm:$0xff] }
  0xca   : > { %2271 = vmatmul.mubr.msk.f32.vlgmr.msra.gmra.mrb[4].mxu0 %vm421_vm0, %v2123_v19  ;;  %2278 = vmatmul.mubr.msk.f32.vlgmr.msra.gmra.mrb[4].mxu1 %vm421_vm0, %v2123_v19 }
  0xcb   : > { %2331 = vmatpush3.bf16.msra.mxu0 %v2330_v39  ;;  %v1790_v39 = vld [vmem:[%s3235_s7 + $0xd8] sm:$0xff] }
 0x195   : > { %v1314_v47 = vpop.f32.mrb[0].mxu0  ;;  %v1391_v48 = vpop.f32.mrb[0].mxu1 }
 0x196   : > { %v2392_v49 = vadd.f32 %v1314_v47, %v404_v43  ;;  %v2396_v50 = vadd.f32 %v1391_v48, %v412_v44  ;;  %v1316_v51 = vpop.f32.mrb[1].mxu0  ;;  %v1393_v52 = vpop.f32.mrb[1].mxu1  ;;  %v1766_v47 = vld [vmem:[%s3235_s7 + $0x18] sm:$0xff] }
 0x197   : > { %v2393_v53 = vadd.f32 %v1316_v51, %v408_v45  ;;  %v2397_v30 = vadd.f32 %v1393_v52, %v416_v46  ;;  %v1796_v51 = vld [vmem:[%s3235_s7 + $0x108] sm:$0xff] }
 0x198   : > { %1689 = vadd.xlane.f32.xlu0 %v2396_v50  ;;  %1600 = vadd.xlane.f32.xlu1 %v2392_v49 }
 0x199   : > { %v1320_v54 = vpop.f32.mrb[2].mxu0  ;;  %v1397_v55 = vpop.f32.mrb[2].mxu1 }
 0x19a   : > { %v2394_v56 = vadd.f32 %v1320_v54, %v404_v43  ;;  %v2398_v57 = vadd.f32 %v1397_v55, %v412_v44  ;;  %v1322_v58 = vpop.f32.mrb[3].mxu0  ;;  %v1399_v59 = vpop.f32.mrb[3].mxu1  ;;  %v1811_v43 = vld [vmem:[%s3235_s7 + $0x180] sm:$0xff]  ;;  %v2332_v44 = vpack.c.bf16 %v1782_v42, %v1781_v41  ;;  %v1813_v54 = vld [vmem:[%s3235_s7 + $0x190] sm:$0xff]  ;;  %v1820_v41 = vld [vmem:[%s3235_s7 + $0x1c8] sm:$0xff] }
 0x19b   : > { %v2395_v60 = vadd.f32 %v1322_v58, %v408_v45  ;;  %v2399_v61 = vadd.f32 %v1399_v59, %v416_v46  ;;  %v1812_v45 = vld [vmem:[%s3235_s7 + $0x188] sm:$0xff]  ;;  %v1765_v46 = vld [vmem:[%s3235_s7 + $0x10] sm:$0xff] }
 0x19c   : > { %1651 = vadd.xlane.f32.xlu0 %v2393_v53  ;;  %v2360_v48 = vpack.c.bf16 %v1812_v45, %v1811_v43  ;;  %2333 = vmatprep.subr.bf16.mxu0 %v2332_v44  ;;  %v1768_v58 = vld [vmem:[%s3235_s7 + $0x28] sm:$0xff]  ;;  %v1773_v42 = vld [vmem:[%s3235_s7 + $0x50] sm:$0xff]  ;;  %v1774_v43 = vld [vmem:[%s3235_s7 + $0x58] sm:$0xff] }
 0x19d   : > { %v2915_v62 = vpop.f32.mrb[4].mxu0  ;;  %v2917_v63 = vpop.f32.mrb[4].mxu1  ;;  %1653 = vadd.xlane.f32.xlu1 %v2395_v60  ;;  %v2350_v45 = vpack.c.bf16 %v1774_v43, %v1773_v42 }
 0x19e   : > { %v2919_v0 = vpop.f32.mrb[5].mxu0  ;;  %v2921_v1 = vpop.f32.mrb[5].mxu1  ;;  %2361 = vmatprep.subr.bf16.mxu1 %v2360_v48 }
 0x1a0   : > { %1727 = vadd.xlane.f32.xlu0 %v2397_v30 }
 0x1a1   : > { %1729 = vadd.xlane.f32.xlu1 %v2399_v61 }
 0x1a4   : > { %1602 = vadd.xlane.f32.xlu0 %v2394_v56 }
 0x1a8   : > { %1691 = vadd.xlane.f32.xlu0 %v2398_v57 }
 0x225   : > { %v1690_v2 = vpop.xlane.xlu0 %1689  ;;  %v1601_v3 = vpop.xlane.xlu1 %1600 }
 0x226   : > { %v1693_v4 = vmul.f32 0.0078125, %v1690_v2  ;;  %v1605_v5 = vmul.f32 0.0078125, %v1601_v3  ;;  %v1798_v2 = vld [vmem:[%s3235_s7 + $0x118] sm:$0xff] }
 0x228   : > { %v2923_v6 = vsub.f32 %v2392_v49, %v1605_v5  ;;  %v2925_v8 = vsub.f32 %v2396_v50, %v1693_v4  ;;  %v2334_v49 = vpack.c.bf16 %v1766_v47, %v1765_v46  ;;  %v1795_v50 = vld [vmem:[%s3235_s7 + $0x100] sm:$0xff]  ;;  %v1785_v4 = vld [vmem:[%s3235_s7 + $0xb0] sm:$0xff]  ;;  %v1786_v5 = vld [vmem:[%s3235_s7 + $0xb8] sm:$0xff] }
 0x229   : > { %v1652_v7 = vpop.xlane.xlu0 %1651  ;;  %v2362_v52 = vpack.c.bf16 %v1796_v51, %v1795_v50  ;;  %v1803_v46 = vld [vmem:[%s3235_s7 + $0x140] sm:$0xff]  ;;  %v1804_v47 = vld [vmem:[%s3235_s7 + $0x148] sm:$0xff]  ;;  %v1821_v51 = vld [vmem:[%s3235_s7 + $0x1d0] sm:$0xff] }
 0x22a   : > { %v1655_v9 = vmul.f32 0.0078125, %v1652_v7  ;;  %v1654_v10 = vpop.xlane.xlu1 %1653  ;;  %v1609_v11 = vmul.f32 %v2923_v6, %v2923_v6  ;;  %v1697_v17 = vmul.f32 %v2925_v8, %v2925_v8  ;;  %2335 = vmatpush3.bf16.msra.mxu0 %v2334_v49  ;;  %v1815_v7 = vld [vmem:[%s3235_s7 + $0x1a0] sm:$0xff]  ;;  %v2378_v48 = vpack.c.bf16 %v1804_v47, %v1803_v46  ;;  %v1792_v50 = vld [vmem:[%s3235_s7 + $0xe8] sm:$0xff] }
 0x22b   : > { %v1656_v15 = vmul.f32 0.0078125, %v1654_v10  ;;  %2363 = vmatpush3.bf16.msra.mxu1 %v2362_v52  ;;  %v1816_v10 = vld [vmem:[%s3235_s7 + $0x1a8] sm:$0xff]  ;;  %v1791_v49 = vld [vmem:[%s3235_s7 + $0xe0] sm:$0xff] }
 0x22c   : > { %v2929_v13 = vsub.f32 %v2393_v53, %v1655_v9  ;;  %1611 = vadd.xlane.f32.xlu0 %v1609_v11  ;;  %v1783_v53 = vld [vmem:[%s3235_s7 + $0xa0] sm:$0xff]  ;;  %v2340_v9 = vpack.c.bf16 %v1786_v5, %v1785_v4  ;;  %v1769_v11 = vld [vmem:[%s3235_s7 + $0x30] sm:$0xff]  ;;  %v2352_v52 = vpack.c.bf16 %v1792_v50, %v1791_v49 }
 0x22d   : > { %v1728_v14 = vpop.xlane.xlu0 %1727  ;;  %v2937_v22 = vsub.f32 %v2395_v60, %v1656_v15  ;;  %v2368_v15 = vpack.c.bf16 %v1816_v10, %v1815_v7  ;;  %v1777_v7 = vld [vmem:[%s3235_s7 + $0x70] sm:$0xff]  ;;  %v1807_v10 = vld [vmem:[%s3235_s7 + $0x160] sm:$0xff] }
 0x22e   : > { %v1731_v16 = vmul.f32 0.0078125, %v1728_v14  ;;  %v1659_v18 = vmul.f32 %v2929_v13, %v2929_v13  ;;  %v1730_v19 = vpop.xlane.xlu1 %1729  ;;  %v1770_v14 = vld [vmem:[%s3235_s7 + $0x38] sm:$0xff]  ;;  %v2174_v46 = vld [vmem:[%s3233_s5] ss:$0 sm:$0xff] }
 0x22f   : > { %v1732_v23 = vmul.f32 0.0078125, %v1730_v19  ;;  %v1660_v33 = vmul.f32 %v2937_v22, %v2937_v22 }
 0x230   : > { %v2935_v20 = vsub.f32 %v2397_v30, %v1731_v16  ;;  %1699 = vadd.xlane.f32.xlu0 %v1697_v17  ;;  %1661 = vadd.xlane.f32.xlu1 %v1659_v18  ;;  %v1784_v30 = vld [vmem:[%s3235_s7 + $0xa8] sm:$0xff]  ;;  %v2342_v16 = vpack.c.bf16 %v1770_v14, %v1769_v11  ;;  %v1799_v17 = vld [vmem:[%s3235_s7 + $0x120] sm:$0xff] }
 0x231   : > { %v1603_v21 = vpop.xlane.xlu0 %1602  ;;  %v2943_v28 = vsub.f32 %v2399_v61, %v1732_v23  ;;  %v2336_v55 = vpack.c.bf16 %v1784_v30, %v1783_v53  ;;  %v1797_v61 = vld [vmem:[%s3235_s7 + $0x110] sm:$0xff]  ;;  %v1800_v18 = vld [vmem:[%s3235_s7 + $0x128] sm:$0xff]  ;;  %v1822_v53 = vld [vmem:[%s3235_s7 + $0x1d8] sm:$0xff] }
 0x232   : > { %v1606_v24 = vmul.f32 0.0078125, %v1603_v21  ;;  %v1735_v25 = vmul.f32 %v2935_v20, %v2935_v20  ;;  %v2366_v3 = vpack.c.bf16 %v1798_v2, %v1797_v61  ;;  %v2370_v19 = vpack.c.bf16 %v1800_v18, %v1799_v17  ;;  %v1787_v21 = vld [vmem:[%s3235_s7 + $0xc0] sm:$0xff]  ;;  %v1788_v23 = vld [vmem:[%s3235_s7 + $0xc8] sm:$0xff]  ;;  %v1794_v61 = vld [vmem:[%s3235_s7 + $0xf8] sm:$0xff] }
 0x233   : > { %v1736_v12 = vmul.f32 %v2943_v28, %v2943_v28  ;;  %2337 = vmatprep.subr.bf16.mxu0 %v2336_v55  ;;  %v1775_v30 = vld [vmem:[%s3235_s7 + $0x60] sm:$0xff]  ;;  %v2380_v55 = vpack.c.bf16 %v1822_v53, %v1821_v51  ;;  %v1808_v14 = vld [vmem:[%s3235_s7 + $0x168] sm:$0xff]  ;;  %v1826_v17 = vld [vmem:[%s3235_s7 + $0x1f8] sm:$0xff] }
 0x234   : > { %v2941_v26 = vsub.f32 %v2394_v56, %v1606_v24  ;;  %1737 = vadd.xlane.f32.xlu1 %v1735_v25  ;;  %v1814_v56 = vld [vmem:[%s3235_s7 + $0x198] sm:$0xff]  ;;  %v1817_v24 = vld [vmem:[%s3235_s7 + $0x1b0] sm:$0xff]  ;;  %v2344_v25 = vpack.c.bf16 %v1788_v23, %v1787_v21  ;;  %v1823_v2 = vld [vmem:[%s3235_s7 + $0x1e0] sm:$0xff] }
 0x235   : > { %v1692_v27 = vpop.xlane.xlu0 %1691  ;;  %v2364_v59 = vpack.c.bf16 %v1814_v56, %v1813_v54  ;;  %v1776_v54 = vld [vmem:[%s3235_s7 + $0x68] sm:$0xff]  ;;  %v1810_v21 = vld [vmem:[%s3235_s7 + $0x178] sm:$0xff] }
 0x236   : > { %v1694_v29 = vmul.f32 0.0078125, %v1692_v27  ;;  %v1610_v32 = vmul.f32 %v2941_v26, %v2941_v26  ;;  %v1818_v27 = vld [vmem:[%s3235_s7 + $0x1b8] sm:$0xff]  ;;  %v2354_v56 = vpack.c.bf16 %v1776_v54, %v1775_v30 }
 0x237   : > { %2365 = vmatprep.subr.bf16.mxu1 %v2364_v59  ;;  %v1793_v59 = vld [vmem:[%s3235_s7 + $0xf0] sm:$0xff] }
 0x238   : > { %v2955_v36 = vsub.f32 %v2398_v57, %v1694_v29  ;;  %1613 = vadd.xlane.f32.xlu0 %v1610_v32  ;;  %1663 = vadd.xlane.f32.xlu1 %v1660_v33  ;;  %v1767_v57 = vld [vmem:[%s3235_s7 + $0x20] sm:$0xff]  ;;  %v1772_v32 = vld [vmem:[%s3235_s7 + $0x48] sm:$0xff]  ;;  %v2372_v33 = vpack.c.bf16 %v1818_v27, %v1817_v24  ;;  %v2356_v4 = vpack.c.bf16 %v1794_v61, %v1793_v59 }
 0x239   : > { %v2338_v60 = vpack.c.bf16 %v1768_v58, %v1767_v57  ;;  %2367 = vmatpush3.bf16.msra.mxu1 %v2366_v3  ;;  %v1771_v29 = vld [vmem:[%s3235_s7 + $0x40] sm:$0xff]  ;;  %v1805_v57 = vld [vmem:[%s3235_s7 + $0x150] sm:$0xff]  ;;  %v1806_v58 = vld [vmem:[%s3235_s7 + $0x158] sm:$0xff] }
 0x23a   : > { %v1698_v40 = vmul.f32 %v2955_v36, %v2955_v36  ;;  %2369 = vmatprep.subr.bf16.mxu1 %v2368_v15  ;;  %v2346_v34 = vpack.c.bf16 %v1772_v32, %v1771_v29  ;;  %v1824_v3 = vld [vmem:[%s3235_s7 + $0x1e8] sm:$0xff]  ;;  %v2386_v15 = vpack.c.bf16 %v1808_v14, %v1807_v10  ;;  %v2168_v61 = vld [vmem:[%s3232_s4] ss:$0 sm:$0xff] }
 0x23b   : > { %2339 = vmatpush3.bf16.msra.mxu0 %v2338_v60  ;;  %v2382_v60 = vpack.c.bf16 %v1806_v58, %v1805_v57  ;;  %v2384_v5 = vpack.c.bf16 %v1824_v3, %v1823_v2 }
 0x23c   : > { %1701 = vadd.xlane.f32.xlu0 %v1698_v40  ;;  %1739 = vadd.xlane.f32.xlu1 %v1736_v12  ;;  %v1819_v40 = vld [vmem:[%s3235_s7 + $0x1c0] sm:$0xff]  ;;  %v2348_v12 = vpack.c.bf16 %v1790_v39, %v1789_v31 }
 0x23d   : > { %2341 = vmatprep.subr.bf16.mxu0 %v2340_v9  ;;  %2371 = vmatpush3.bf16.msra.mxu1 %v2370_v19  ;;  %v2376_v44 = vpack.c.bf16 %v1820_v41, %v1819_v40  ;;  %v1778_v9 = vld [vmem:[%s3235_s7 + $0x78] sm:$0xff]  ;;  %v1809_v19 = vld [vmem:[%s3235_s7 + $0x170] sm:$0xff] }
 0x23e   : > { %2373 = vmatprep.subr.bf16.mxu1 %v2372_v33  ;;  %v2358_v11 = vpack.c.bf16 %v1778_v9, %v1777_v7  ;;  %v2390_v23 = vpack.c.bf16 %v1810_v21, %v1809_v19  ;;  %v1502_v9 = vadd.f32 %v2168_v61, %v2919_v0 }
 0x23f   : > { %2343 = vmatpush3.bf16.msra.mxu0 %v2342_v16  ;;  %v1825_v16 = vld [vmem:[%s3235_s7 + $0x1f0] sm:$0xff] }
 0x240   : > { %2345 = vmatprep.subr.bf16.mxu0 %v2344_v25  ;;  %v2388_v18 = vpack.c.bf16 %v1826_v17, %v1825_v16 }
 0x241   : > { %2375 = vmatpush3.bf16.msra.mxu1 %v2374_v38 }
 0x242   : > { %2377 = vmatprep.subr.bf16.mxu1 %v2376_v44 }
 0x243   : > { %2347 = vmatpush3.bf16.msra.mxu0 %v2346_v34 }
 0x244   : > { %2349 = vmatprep.subr.bf16.mxu0 %v2348_v12 }
 0x245   : > { %2379 = vmatpush3.bf16.msra.mxu1 %v2378_v48 }
 0x246   : > { %2381 = vmatprep.subr.bf16.mxu1 %v2380_v55 }
 0x247   : > { %2351 = vmatpush3.bf16.msra.mxu0 %v2350_v45 }
 0x248   : > { %2353 = vmatprep.subr.bf16.mxu0 %v2352_v52  ;;  %v2175_v52 = vld [vmem:[%s3234_s6] ss:$0 sm:$0xff] }
 0x249   : > { %2383 = vmatpush3.bf16.msra.mxu1 %v2382_v60 }
 0x24a   : > { %2385 = vmatprep.subr.bf16.mxu1 %v2384_v5 }
 0x24b   : > { %2355 = vmatpush3.bf16.msra.mxu0 %v2354_v56 }
 0x24c   : > { %2357 = vmatprep.subr.bf16.mxu0 %v2356_v4 }
 0x24d   : > { %2387 = vmatpush3.bf16.msra.mxu1 %v2386_v15 }
 0x24e   : > { %2389 = vmatprep.subr.bf16.mxu1 %v2388_v18 }
 0x24f   : > { %2359 = vmatpush3.bf16.msra.mxu0 %v2358_v11 }
 0x251   : > { %2391 = vmatpush3.bf16.msra.mxu1 %v2390_v23 }
 0x2b9   : > { %v1612_v24 = vpop.xlane.xlu0 %1611 }
 0x2ba   : > { %v1615_v25 = vmul.f32 0.0078125, %v1612_v24 }
 0x2bc   : > { %v1617_v27 = vadd.f32 1e-05, %v1615_v25 }
 0x2bd   : > { %v1700_v29 = vpop.xlane.xlu0 %1699  ;;  %v1662_v32 = vpop.xlane.xlu1 %1661 }
 0x2be   : > { %2494 = vrsqrt.f32 %v1617_v27  ;;  %v1703_v33 = vmul.f32 0.0078125, %v1700_v29  ;;  %v1665_v34 = vmul.f32 0.0078125, %v1662_v32 }
 0x2c0   : > { %v1705_v35 = vadd.f32 1e-05, %v1703_v33  ;;  %v1667_v37 = vadd.f32 1e-05, %v1665_v34 }
 0x2c1   : > { %v1738_v38 = vpop.xlane.xlu1 %1737 }
 0x2c2   : > { %2496 = vrsqrt.f32 %v1705_v35  ;;  %v1741_v31 = vmul.f32 0.0078125, %v1738_v38 }
 0x2c3   : > { %2498 = vrsqrt.f32 %v1667_v37 }
 0x2c4   : > { %v1743_v39 = vadd.f32 1e-05, %v1741_v31 }
 0x2c5   : > { %v1614_v40 = vpop.xlane.xlu0 %1613  ;;  %v1664_v12 = vpop.xlane.xlu1 %1663 }
 0x2c6   : > { %2500 = vrsqrt.f32 %v1743_v39  ;;  %v1616_v41 = vmul.f32 0.0078125, %v1614_v40  ;;  %v1666_v42 = vmul.f32 0.0078125, %v1664_v12 }
 0x2c8   : > { %v2495_v43 = vpop.eup %2494  ;;  %v1618_v44 = vadd.f32 1e-05, %v1616_v41  ;;  %v1668_v45 = vadd.f32 1e-05, %v1666_v42 }
 0x2c9   : > { %v1621_v47 = vmul.f32 %v2495_v43, %v2923_v6  ;;  %v1702_v48 = vpop.xlane.xlu0 %1701  ;;  %v1740_v49 = vpop.xlane.xlu1 %1739 }
 0x2ca   : > { %2502 = vrsqrt.f32 %v1618_v44  ;;  %v1704_v50 = vmul.f32 0.0078125, %v1702_v48  ;;  %v1742_v51 = vmul.f32 0.0078125, %v1740_v49 }
 0x2cb   : > { %2504 = vrsqrt.f32 %v1668_v45  ;;  %v1629_v53 = vmul.f32 %v2174_v46, %v1621_v47 }
 0x2cc   : > { %v2497_v30 = vpop.eup %2496  ;;  %v1706_v54 = vadd.f32 1e-05, %v1704_v50  ;;  %v1744_v55 = vadd.f32 1e-05, %v1742_v51 }
 0x2cd   : > { %v2499_v56 = vpop.eup %2498  ;;  %v1709_v57 = vmul.f32 %v2497_v30, %v2925_v8  ;;  %v1637_v58 = vadd.f32 %v2175_v52, %v1629_v53 }
 0x2ce   : > { %2506 = vrsqrt.f32 %v1706_v54  ;;  %v1671_v6 = vmul.f32 %v2499_v56, %v2929_v13 }
 0x2cf   : > { %2508 = vrsqrt.f32 %v1744_v55  ;;  %v1711_v59 = vmul.f32 %v2174_v46, %v1709_v57  ;;  %v1639_v3 = vmax.f32 %v1637_v58, 0.0 }
 0x2d0   : > { %v2501_v60 = vpop.eup %2500  ;;  %v1673_v2 = vmul.f32 %v2174_v46, %v1671_v6 }
 0x2d1   : > { %v1747_v4 = vmul.f32 %v2501_v60, %v2935_v20  ;;  %v1713_v5 = vadd.f32 %v2175_v52, %v1711_v59  ;;  %v1643_v15 = vadd.f32 %v1639_v3, %v1502_v9 }
 0x2d2   : > { %v1675_v7 = vadd.f32 %v2175_v52, %v1673_v2 }
 0x2d3   : > { %v1749_v8 = vmul.f32 %v2174_v46, %v1747_v4  ;;  %v1715_v14 = vmax.f32 %v1713_v5, 0.0  ;;  %v1645_v0 = vmul.f32 0.70710677, %v1643_v15 }
 0x2d4   : > { %v2503_v10 = vpop.eup %2502  ;;  %v1677_v11 = vmax.f32 %v1675_v7, 0.0 }
 0x2d5   : > { %v2505_v13 = vpop.eup %2504  ;;  %v1751_v16 = vadd.f32 %v2175_v52, %v1749_v8  ;;  %v1622_v17 = vmul.f32 %v2503_v10, %v2941_v26  ;;  %v1719_v25 = vadd.f32 %v1715_v14, %v1502_v9  ;;  %v1507_v26 = vadd.f32 %v2915_v62, %v2168_v61 }
 0x2d6   : > { %v1681_v18 = vadd.f32 %v1677_v11, %v1502_v9  ;;  %v1672_v19 = vmul.f32 %v2505_v13, %v2937_v22 }
 0x2d7   : > { %v1753_v21 = vmax.f32 %v1751_v16, 0.0  ;;  %v1630_v23 = vmul.f32 %v2174_v46, %v1622_v17  ;;  %v1721_v39 = vmul.f32 0.70710677, %v1719_v25 }
 0x2d8   : > { %v2507_v24 = vpop.eup %2506  ;;  %v1683_v20 = vmul.f32 0.70710677, %v1681_v18  ;;  %v1674_v27 = vmul.f32 %v2174_v46, %v1672_v19 }
 0x2d9   : > { %v2509_v29 = vpop.eup %2508  ;;  %v1757_v32 = vadd.f32 %v1753_v21, %v1502_v9  ;;  %v1638_v33 = vadd.f32 %v2175_v52, %v1630_v23  ;;  %v1710_v34 = vmul.f32 %v2507_v24, %v2955_v36 }
 0x2da   : > { %1899 = vmatprep.mubr.f32.mxu0 %v1683_v20  ;;  %v1676_v35 = vadd.f32 %v2175_v52, %v1674_v27  ;;  %v1748_v37 = vmul.f32 %v2509_v29, %v2943_v28 }
 0x2db   : > { %1900 = vmatmul.mubr.f32.vlgmr.msra.gmra.mrb[6].mxu0 %v1645_v0  ;;  %v1759_v22 = vmul.f32 0.70710677, %v1757_v32  ;;  %v1640_v38 = vmax.f32 %v1638_v33, 0.0  ;;  %v1712_v31 = vmul.f32 %v2174_v46, %v1710_v34 }
 0x2dc   : > { %v1678_v40 = vmax.f32 %v1676_v35, 0.0  ;;  %v1750_v12 = vmul.f32 %v2174_v46, %v1748_v37  ;;  %v2171_v46 = vld [vmem:[%s3237_s9] ss:$0 sm:$0xff] }
 0x2dd   : > { %1974 = vmatprep.mubr.f32.mxu1 %v1759_v22  ;;  %v1644_v41 = vadd.f32 %v1640_v38, %v1507_v26  ;;  %v1714_v42 = vadd.f32 %v2175_v52, %v1712_v31  ;;  %v1593_v60 = vadd.f32 %v2917_v63, %v2171_v46 }
 0x2de   : > { %1975 = vmatmul.mubr.f32.vlgmr.msra.gmra.mrb[6].mxu1 %v1721_v39  ;;  %v1682_v43 = vadd.f32 %v1678_v40, %v1507_v26  ;;  %v1752_v36 = vadd.f32 %v2175_v52, %v1750_v12  ;;  %v1588_v52 = vadd.f32 %v2171_v46, %v2921_v1 }
 0x2df   : > { %v1646_v44 = vmul.f32 0.70710677, %v1644_v41  ;;  %v1716_v45 = vmax.f32 %v1714_v42, 0.0 }
 0x2e0   : > { %v1684_v47 = vmul.f32 0.70710677, %v1682_v43  ;;  %v1754_v28 = vmax.f32 %v1752_v36, 0.0 }
 0x2e1   : > { %v1720_v48 = vadd.f32 %v1716_v45, %v1507_v26 }
 0x2e2   : > { %1904 = vmatprep.mubr.f32.mxu0 %v1684_v47  ;;  %v1758_v62 = vadd.f32 %v1754_v28, %v1507_v26 }
 0x2e3   : > { %1905 = vmatmul.mubr.f32.gmra.mrb[8].mxu0 %v1646_v44  ;;  %v1722_v49 = vmul.f32 0.70710677, %v1720_v48 }
 0x2e4   : > { %v1760_v50 = vmul.f32 0.70710677, %v1758_v62 }
 0x2e6   : > { %1979 = vmatprep.mubr.f32.mxu1 %v1760_v50 }
 0x2e7   : > { %1980 = vmatmul.mubr.f32.gmra.mrb[8].mxu1 %v1722_v49 }
 0x3ae   : > { %v2222_v51 = vpop.f32.mrb[6].mxu0 }
 0x3af   : > { %v2223_v53 = vpop.f32.mrb[7].mxu0 }
 0x3b0   : > { %v2224_v30 = vadd.f32 %v2223_v53, %v2222_v51 }
 0x3b1   : > { %v2260_v54 = vpop.f32.mrb[6].mxu1 }
 0x3b2   : > { %v1902_v55 = vadd.f32 %v2224_v30, %v1588_v52  ;;  %v2261_v56 = vpop.f32.mrb[7].mxu1 }
 0x3b3   : > { %v2262_v57 = vadd.f32 %v2261_v56, %v2260_v54 }
 0x3b5   : > { %v1977_v58 = vadd.f32 %v2262_v57, %v1902_v55 }
 0x3b6   : > { %v2225_v6 = vpop.f32.mrb[8].mxu0 }
 0x3b7   : > { %1986 = vst.msk [vmem:[%s366_s20] sm:$0xff] %vm1985_vm11, %v1977_v58  ;;  %v2226_v59 = vpop.f32.mrb[9].mxu0 }
 0x3b8   : > { %v2227_v61 = vadd.f32 %v2226_v59, %v2225_v6 }
 0x3ba   : > { %v1907_v1 = vadd.f32 %v2227_v61, %v1593_v60  ;;  %v2263_v2 = vpop.f32.mrb[8].mxu1 }
 0x3bb   : > { %v2264_v3 = vpop.f32.mrb[9].mxu1 }
 0x3bc   : > { %v2265_v4 = vadd.f32 %v2264_v3, %v2263_v2 }
 0x3be   : > { %v1982_v5 = vadd.f32 %v2265_v4, %v1907_v1 }
 0x3c0   : > { %1987 = vst.msk [vmem:[%s366_s20 + $0x8] sm:$0xff] %vm1985_vm11, %v1982_v5 }
 0x3c1   : > { %2523 = shalt.err (!%p2520_p5)
}
 0x3c2   : > { %s2524_s12 = scalar_lea.hbm %s3177_s28, 256  ;;  %s2528_s21 = scalar_lea.hbm %s3238_s10, 512 }
 0x3c3   : > { %p2525_p6 = scmp.ne.s32.totalorder %s3177_s28, %s2524_s12  ;;  %p2529_p10 = scmp.lt.u32.totalorder %s3177_s28, %s3238_s10 }
 0x3c4   : > { %p2530_p11 = scmp.lt.u32.totalorder %s2528_s21, %s2524_s12  ;;  %p2532_p13 = scmp.lt.u32.totalorder %s2524_s12, %s3177_s28 }
 0x3c5   : > { %p2526_p7 = pnand %p2525_p6, %p2690_p4 }
 0x3c6   : > { %p2531_p12 = por %p2530_p11, %p2529_p10 }
 0x3c7   : > { %p2527_p9 = pneg %p2526_p7 }
 0x3c8   : > { %p2533_p0 = por %p2532_p13, %p2531_p12 }
 0x3ca   : > { %p2534_p1 = pnand %p2533_p0, %p2527_p9 }
 0x3cc   : > { %2537 = shalt.err (!%p2534_p1)
}
 0x3cd   : > { %s2593_s29 = smov 128   ;;  %s2594_s16 = smov 8  }
 0x3ce   : > { %2433 = dma.vmem_to_hbm [thread:$0]  (%p2690_p4), %s3179_s22, 256, %s3177_s28, %s3182_s30, %s2593_s29, %s2593_s29, %s2594_s16  }
 0x3cf PF: > { %p2439_p2 = scmp.ge.s32.totalorder %s2588_s18, 2  ;;  %s2019_s24 = sand.u32 1, %s2568_s13  }
 0x3d0   : > { %s2020_s11 = scalar_lea.sflag [#allocation5], %s2019_s24 }
 0x3d1   : > { %p2436_p3 = pnand %p2439_p2, %p2697_p8 }
 0x3d3   : > { %2563 = dma.done.wait (!%p2436_p3), %s2020_s11, 256  }
 0x3d4   : > { %2565 = vsyncadd (!%p2436_p3), %s2020_s11, 4294967040  ;;  %s23_s18 = sadd.s32 1, %s2588_s18   ;;  %s3245_s23 = sld [smem:[#allocation7_spill]] }
 0x3d5   : > { %p20_p5 = scmp.ge.s32.totalorder %s23_s18, 4   ;;  %s3246_s13 = smov %s2572_s14 }
 0x3d6   : > { %s3247_s14 = smov %s2576_s15  ;;  %s3248_s15 = smov %s2703_s26 }
 0x3d7   : > { %s3249_s16 = smov %s2584_s17  ;;  %22 = sbr.rel (!%p20_p5) target bundleno = 6 (0x6), region = 104 }
 0x3da   : > { %s3250_s17 = smov %s3245_s23 }
 0x3de   :  { %2025 = vsyncpa [#allocation5], 1 }
 0x3df   :  { %2027 = vsyncpa [#allocation5 + $0x1], 1 }

</bundles_post_ra>
